<compile_context>
chip_gen: v7x
topology: tpu7x:2x2x1
jax: 0.10.0
libtpu: 0.0.40
codegen_flags: <defaults>
</compile_context>

<pallas_src>
import functools

import jax
import jax.numpy as jnp
from jax.experimental import pallas as pl
from jax.experimental.pallas import tpu as pltpu


def _gru_kernel(x_ref, wih_ref, whh_ref, bih_ref, bhn_ref, wfc_ref, bfc_ref,
                out_ref, gi_ref, h_ref, *, t_blk, b_tile, hp, seq_len):
    """One (batch-tile, time-block) grid step of the GRU recurrence."""
    n = pl.program_id(1)                       # time-block index (sequential axis)

    # h0 = zeros (PyTorch default) at the first time block of every batch tile.
    @pl.when(n == 0)
    def _():
        h_ref[...] = jnp.zeros_like(h_ref)

    # Hoisted input projection for the whole time block: one well-shaped
    # (t_blk*b_tile, I) @ (I, 3Hp) MXU call. The r/z slabs of b_hh were folded
    # into bih in the wrapper, so this already holds the full r/z input bias.
    # Staged into VMEM scratch so the recurrence reads bounded per-step slices.
    gi_ref[...] = (jnp.dot(x_ref[0, 0], wih_ref[...],
                           preferred_element_type=jnp.float32)
                   + bih_ref[...])                          # (t_blk*b_tile, 3Hp) f32

    whh = whh_ref[...]                                      # (Hp, 3Hp) bf16, resident
    # b_hn sits inside r * (h W_hn^T + b_hn) and cannot be folded into bih;
    # hoist its broadcast once, above the serial time loop.
    bhn = jnp.broadcast_to(bhn_ref[...], (b_tile, hp))      # (b_tile, Hp) f32

    mask_tail = (seq_len % t_blk) != 0                      # static Python bool
    base_t = n * t_blk

    def step(t, h):
        row0 = pl.multiple_of(t * b_tile, b_tile)
        gi = gi_ref[pl.ds(row0, b_tile), :]                 # (b_tile, 3Hp) f32
        gh = jnp.dot(h.astype(jnp.bfloat16), whh,
                     preferred_element_type=jnp.float32)    # (b_tile, 3Hp) f32
        # Fused r/z sigmoid over the contiguous first 2*Hp columns.
        rz = jax.nn.sigmoid(gi[:, :2 * hp] + gh[:, :2 * hp])
        r = rz[:, :hp]
        z = rz[:, hp:]
        ng = jnp.tanh(gi[:, 2 * hp:] + r * (gh[:, 2 * hp:] + bhn))
        h_new = ng + z * (h - ng)                           # == (1-z)*ng + z*h
        if mask_tail:
            # Padded timesteps past seq_len must NOT update h (a GRU updates h
            # even on zero input): keep the previous state instead.
            h_new = jnp.where(base_t + t < seq_len, h_new, h)
        return h_new

    h = jax.lax.fori_loop(0, t_blk, step, h_ref[...], unroll=min(t_blk, 8))
    h_ref[...] = h

    # Final time block: fc head on the last hidden state -> (b_tile, 128) padded.
    @pl.when(n == pl.num_programs(1) - 1)
    def _():
        y = (jnp.dot(h.astype(jnp.bfloat16), wfc_ref[...],
                     preferred_element_type=jnp.float32) + bfc_ref[...])
        out_ref[...] = y.astype(out_ref.dtype)


def _vmem_limit_bytes():
    """Portable scoped-VMEM budget: 48 MiB on v7x (64 MiB physical),
    96 MiB on v5e/v6e (128 MiB physical) when the chip can be queried."""
    phys = 64 * 1024 * 1024
    try:
        info = pltpu.get_tpu_info()
        phys = int(getattr(info, "vmem_capacity_bytes", phys))
    except Exception:
        pass
    return max(32 * 1024 * 1024, min(96 * 1024 * 1024, phys * 3 // 4))


def _pick_t_blk(T, b_tile, input_size, hp, vmem_limit, cap=256):
    """Largest time block (<= cap, <= T) whose gi scratch + double-buffered x
    block fits in the VMEM budget next to the (double-buffered) resident weights."""
    weights = 2 * 2 * (input_size * 3 * hp + hp * 3 * hp + hp * 128)  # bf16, 2-buffered
    fixed = weights + 4 * (b_tile * hp + 2 * b_tile * 128 + 2 * 4 * hp)
    budget = vmem_limit * 6 // 10 - fixed
    t = max(1, min(cap, T))
    while t > 1:
        need = 4 * t * b_tile * 3 * hp + 2 * 2 * t * b_tile * input_size
        if need <= budget:
            break
        t //= 2
    return max(1, t)


def gru_model_forward(x, params, t_blk=None):
    """x: (B, T, I) float32 (batch_first, like PyTorch). Returns (B, 1) float32."""
    B, T, I = x.shape
    w_ih, w_hh = params["weight_ih_l0"], params["weight_hh_l0"]   # (3H, I), (3H, H)
    b_ih, b_hh = params["bias_ih_l0"], params["bias_hh_l0"]       # (3H,), (3H,)
    w_fc, b_fc = params["fc_weight"], params["fc_bias"]           # (1, H), (1,)
    H = w_hh.shape[1]

    Hp = ((H + 127) // 128) * 128          # pad each gate slab to 128 lanes
    B8 = max(8, ((B + 7) // 8) * 8)        # pad batch to a full sublane
    # v7x has 2 TensorCores: give the parallel batch axis 2 tiles when there is
    # enough batch; v5e/v6e (1 TC) then just run both tiles sequentially.
    n_bblk = 2 if B8 >= 16 else 1
    b_tile = ((-(-B8 // n_bblk) + 7) // 8) * 8
    Bp = n_bblk * b_tile

    vmem_limit = _vmem_limit_bytes()
    if t_blk is None:
        t_blk = _pick_t_blk(T, b_tile, I, Hp, vmem_limit)
    n_tblk = -(-T // t_blk)
    Tp = n_tblk * t_blk

    # --- layout plumbing (plain JAX glue, outside the kernel) ---
    # x: (B,T,I) -> (T,B,I) -> pad T/B -> (n_bblk, n_tblk, t_blk*b_tile, I) bf16,
    # rows within a block ordered t-major, batch-minor (matches gi scratch slicing).
    x_tbi = jnp.transpose(x.astype(jnp.float32), (1, 0, 2))
    x_tbi = jnp.pad(x_tbi, ((0, Tp - T), (0, Bp - B), (0, 0)))
    x_blocks = (x_tbi.reshape(n_tblk, t_blk, n_bblk, b_tile, I)
                .transpose(2, 0, 1, 3, 4)
                .reshape(n_bblk, n_tblk, t_blk * b_tile, I)
                .astype(jnp.bfloat16))

    def pack_gate_cols(mat):
        # (K, 3H) gate-major columns -> (K, 3*Hp) with each gate slab lane-aligned.
        K = mat.shape[0]
        out = jnp.zeros((K, 3, Hp), mat.dtype)
        out = out.at[:, :, :H].set(mat.reshape(K, 3, H))
        return out.reshape(K, 3 * Hp)

    wih_p = pack_gate_cols(w_ih.T.astype(jnp.float32)).astype(jnp.bfloat16)   # (I, 3Hp)
    whh_t = jnp.zeros((Hp, 3 * H), jnp.float32).at[:H, :].set(
        w_hh.T.astype(jnp.float32))                                           # pad K to Hp
    whh_p = pack_gate_cols(whh_t).astype(jnp.bfloat16)                        # (Hp, 3Hp)

    # Fold the r/z slabs of b_hh into the input bias; keep b_hn separate (it sits
    # inside r * (.) and must be applied before the r multiply).
    b_ih_f = b_ih.astype(jnp.float32)
    b_hh_f = b_hh.astype(jnp.float32)
    bih_fold = jnp.concatenate([b_ih_f[:2 * H] + b_hh_f[:2 * H], b_ih_f[2 * H:]])
    bih_p = pack_gate_cols(bih_fold.reshape(1, 3 * H))                        # (1, 3Hp) f32
    bhn_p = jnp.zeros((1, Hp), jnp.float32).at[0, :H].set(b_hh_f[2 * H:])     # (1, Hp) f32

    wfc_p = (jnp.zeros((Hp, 128), jnp.float32)
             .at[:H, 0].set(w_fc[0].astype(jnp.float32))).astype(jnp.bfloat16)
    bfc_p = jnp.zeros((1, 128), jnp.float32).at[0, 0].set(b_fc[0].astype(jnp.float32))

    kernel = functools.partial(_gru_kernel, t_blk=t_blk, b_tile=b_tile, hp=Hp,
                               seq_len=T)

    out = pl.pallas_call(
        kernel,
        out_shape=jax.ShapeDtypeStruct((Bp, 128), jnp.float32),
        grid_spec=pltpu.PrefetchScalarGridSpec(
            num_scalar_prefetch=0,
            grid=(n_bblk, n_tblk),
            in_specs=[
                pl.BlockSpec((1, 1, t_blk * b_tile, I),
                             lambda b, n: (b, n, 0, 0)),                 # x time block
                pl.BlockSpec((I, 3 * Hp), lambda b, n: (0, 0)),          # W_ih^T (bf16)
                pl.BlockSpec((Hp, 3 * Hp), lambda b, n: (0, 0)),         # W_hh^T (bf16)
                pl.BlockSpec((1, 3 * Hp), lambda b, n: (0, 0)),          # b_ih (+ b_hh r/z)
                pl.BlockSpec((1, Hp), lambda b, n: (0, 0)),              # b_hn
                pl.BlockSpec((Hp, 128), lambda b, n: (0, 0)),            # fc weight^T
                pl.BlockSpec((1, 128), lambda b, n: (0, 0)),             # fc bias
            ],
            out_specs=pl.BlockSpec((b_tile, 128), lambda b, n: (b, 0)),  # resident per tile
            scratch_shapes=[
                pltpu.VMEM((t_blk * b_tile, 3 * Hp), jnp.float32),       # staged gi
                pltpu.VMEM((b_tile, Hp), jnp.float32),                   # hidden-state carry
            ]),
        compiler_params=pltpu.CompilerParams(
            dimension_semantics=("parallel", "arbitrary"),   # batch parallel, time serial
            vmem_limit_bytes=vmem_limit,
        ),
    )(x_blocks, wih_p, whh_p, bih_p, bhn_p, wfc_p, bfc_p)

    return out[:B, :1]


def reference_forward(x, params):
    """Pure-JAX f32 reference matching torch.nn.GRU + Linear semantics."""
    w_ih, w_hh = params["weight_ih_l0"], params["weight_hh_l0"]
    b_ih, b_hh = params["bias_ih_l0"], params["bias_hh_l0"]
    w_fc, b_fc = params["fc_weight"], params["fc_bias"]
    H = w_hh.shape[1]
    B = x.shape[0]

    def step(h, x_t):
        gi = x_t @ w_ih.T + b_ih
        gh = h @ w_hh.T + b_hh
        i_r, i_z, i_n = gi[:, :H], gi[:, H:2 * H], gi[:, 2 * H:]
        h_r, h_z, h_n = gh[:, :H], gh[:, H:2 * H], gh[:, 2 * H:]
        r = jax.nn.sigmoid(i_r + h_r)
        z = jax.nn.sigmoid(i_z + h_z)
        n = jnp.tanh(i_n + r * h_n)
        h_new = (1.0 - z) * n + z * h
        return h_new, None

    h0 = jnp.zeros((B, H), jnp.float32)
    h_last, _ = jax.lax.scan(step, h0, jnp.transpose(x, (1, 0, 2)))
    return h_last @ w_fc.T + b_fc


def init_params(key, input_size, hidden_size):
    ks = jax.random.split(key, 6)
    scale = 1.0 / jnp.sqrt(hidden_size)
    return {
        "weight_ih_l0": jax.random.uniform(ks[0], (3 * hidden_size, input_size),
                                           jnp.float32, -scale, scale),
        "weight_hh_l0": jax.random.uniform(ks[1], (3 * hidden_size, hidden_size),
                                           jnp.float32, -scale, scale),
        "bias_ih_l0": jax.random.uniform(ks[2], (3 * hidden_size,), jnp.float32, -scale, scale),
        "bias_hh_l0": jax.random.uniform(ks[3], (3 * hidden_size,), jnp.float32, -scale, scale),
        "fc_weight": jax.random.uniform(ks[4], (1, hidden_size), jnp.float32, -scale, scale),
        "fc_bias": jax.random.uniform(ks[5], (1,), jnp.float32, -scale, scale),
    }


if __name__ == "__main__":
    B, T, I, H = 2, 8, 8, 32
    key = jax.random.PRNGKey(0)
    kx, kp, kx2 = jax.random.split(key, 3)
    x = jax.random.normal(kx, (B, T, I), jnp.float32)
    params = init_params(kp, I, H)

    out = jax.block_until_ready(gru_model_forward(x, params))
    ref = reference_forward(x, params)
    assert out.shape == (B, 1)
    # bf16 matmul operands -> loosened tolerance vs f32 reference.
    assert jnp.allclose(out, ref, atol=3e-2, rtol=3e-2), (out, ref)

    # Tail-masking path: T not divisible by the time block (forced t_blk=4).
    T2 = 13
    x2 = jax.random.normal(kx2, (B, T2, I), jnp.float32)
    out2 = jax.block_until_ready(gru_model_forward(x2, params, t_blk=4))
    ref2 = reference_forward(x2, params)
    assert out2.shape == (B, 1)
    assert jnp.allclose(out2, ref2, atol=3e-2, rtol=3e-2), (out2, ref2)

    print("KERNEL_OK")
</pallas_src>

<mosaic_0001>
module attributes {stable_mosaic.version = 11 : i64} {
  func.func @_gru_kernel(%arg0: i32, %arg1: i32, %arg2: memref<1x1x64x8xbf16, #tpu.memory_space<vmem>>, %arg3: memref<8x384xbf16, #tpu.memory_space<vmem>>, %arg4: memref<128x384xbf16, #tpu.memory_space<vmem>>, %arg5: memref<1x384xf32, #tpu.memory_space<vmem>>, %arg6: memref<1x128xf32, #tpu.memory_space<vmem>>, %arg7: memref<128x128xbf16, #tpu.memory_space<vmem>>, %arg8: memref<1x128xf32, #tpu.memory_space<vmem>>, %arg9: memref<8x128xf32, #tpu.memory_space<vmem>>, %arg10: memref<64x384xf32, #tpu.memory_space<vmem>>, %arg11: memref<8x128xf32, #tpu.memory_space<vmem>>) attributes {dimension_semantics = [#tpu.dimension_semantics<parallel>, #tpu.dimension_semantics<arbitrary>], iteration_bounds = array<i64: 1, 1>, scalar_prefetch = 0 : i64, scratch_operands = 2 : i64, tpu.core_type = #tpu.core_type<tc>, window_params = [{transform_indices = @transform_0, window_bounds = array<i64: 1, 1, 64, 8>}, {pipeline_mode = #tpu.pipeline_mode<synchronous>, transform_indices = @transform_1, window_bounds = array<i64: 8, 384>}, {pipeline_mode = #tpu.pipeline_mode<synchronous>, transform_indices = @transform_2, window_bounds = array<i64: 128, 384>}, {pipeline_mode = #tpu.pipeline_mode<synchronous>, transform_indices = @transform_3, window_bounds = array<i64: 1, 384>}, {pipeline_mode = #tpu.pipeline_mode<synchronous>, transform_indices = @transform_4, window_bounds = array<i64: 1, 128>}, {pipeline_mode = #tpu.pipeline_mode<synchronous>, transform_indices = @transform_5, window_bounds = array<i64: 128, 128>}, {pipeline_mode = #tpu.pipeline_mode<synchronous>, transform_indices = @transform_6, window_bounds = array<i64: 1, 128>}, {transform_indices = @transform_7, window_bounds = array<i64: 8, 128>}]} {
    %c0_i32 = arith.constant 0 : i32
    %0 = arith.cmpi eq, %arg1, %c0_i32 : i32
    %1 = arith.extui %0 : i1 to i32
    %c0_i32_0 = arith.constant 0 : i32
    %2 = arith.cmpi ne, %1, %c0_i32_0 : i32
    scf.if %2 {
      %cst_53 = arith.constant 0.000000e+00 : f32
      %220 = vector.broadcast %cst_53 : f32 to vector<8x128xf32>
      %c0_54 = arith.constant 0 : index
      %c0_55 = arith.constant 0 : index
      %221 = vector.load %arg11[%c0_54, %c0_55] : memref<8x128xf32, #tpu.memory_space<vmem>>, vector<8x128xf32>
      tpu.vector_store %arg11[%c0_54, %c0_55], %220 {strides = array<i32>} : memref<8x128xf32, #tpu.memory_space<vmem>>, vector<8x128xf32>,
    } else {
    }
    %c0 = arith.constant 0 : index
    %c0_1 = arith.constant 0 : index
    %c0_2 = arith.constant 0 : index
    %c0_3 = arith.constant 0 : index
    %3 = vector.load %arg2[%c0, %c0_1, %c0_2, %c0_3] : memref<1x1x64x8xbf16, #tpu.memory_space<vmem>>, vector<1x1x64x8xbf16>
    %4 = vector.shape_cast %3 : vector<1x1x64x8xbf16> to vector<64x8xbf16>
    %c0_4 = arith.constant 0 : index
    %c0_5 = arith.constant 0 : index
    %5 = vector.load %arg3[%c0_4, %c0_5] : memref<8x384xbf16, #tpu.memory_space<vmem>>, vector<8x384xbf16>
    %cst = arith.constant dense<0.000000e+00> : vector<64x384xf32>
    %6 = tpu.matmul %4, %5, %cst {dimension_numbers = #tpu.dot_dimension_numbers<[1], [0], [0], [1], [0, 0, 1, 1], [], []>} : vector<64x8xbf16>, vector<8x384xbf16>, vector<64x384xf32> -> vector<64x384xf32>
    %c0_6 = arith.constant 0 : index
    %c0_7 = arith.constant 0 : index
    %7 = vector.load %arg5[%c0_6, %c0_7] : memref<1x384xf32, #tpu.memory_space<vmem>>, vector<1x384xf32>
    %8 = vector.broadcast %7 : vector<1x384xf32> to vector<64x384xf32>
    %9 = arith.addf %6, %8 : vector<64x384xf32>
    %c0_8 = arith.constant 0 : index
    %c0_9 = arith.constant 0 : index
    %10 = vector.load %arg10[%c0_8, %c0_9] : memref<64x384xf32, #tpu.memory_space<vmem>>, vector<64x384xf32>
    tpu.vector_store %arg10[%c0_8, %c0_9], %9 {strides = array<i32>} : memref<64x384xf32, #tpu.memory_space<vmem>>, vector<64x384xf32>,
    %c0_10 = arith.constant 0 : index
    %c0_11 = arith.constant 0 : index
    %11 = vector.load %arg4[%c0_10, %c0_11] : memref<128x384xbf16, #tpu.memory_space<vmem>>, vector<128x384xbf16>
    %c0_12 = arith.constant 0 : index
    %c0_13 = arith.constant 0 : index
    %12 = vector.load %arg6[%c0_12, %c0_13] : memref<1x128xf32, #tpu.memory_space<vmem>>, vector<1x128xf32>
    %13 = vector.shape_cast %12 : vector<1x128xf32> to vector<1x128xf32>
    %14 = vector.broadcast %13 : vector<1x128xf32> to vector<8x128xf32>
    %c0_14 = arith.constant 0 : index
    %c0_15 = arith.constant 0 : index
    %15 = vector.load %arg11[%c0_14, %c0_15] : memref<8x128xf32, #tpu.memory_space<vmem>>, vector<8x128xf32>
    %c0_i32_16 = arith.constant 0 : i32
    %c8_i32 = arith.constant 8 : i32
    %16 = arith.muli %c0_i32_16, %c8_i32 : i32
    %17 = tpu.assume_multiple %16, 8 : i32
    %18 = arith.index_cast %17 : i32 to index
    %c0_17 = arith.constant 0 : index
    %19 = vector.load %arg10[%18, %c0_17] : memref<64x384xf32, #tpu.memory_space<vmem>>, vector<8x384xf32>
    %20 = arith.truncf %15 : vector<8x128xf32> to vector<8x128xbf16>
    %cst_18 = arith.constant dense<0.000000e+00> : vector<8x384xf32>
    %21 = tpu.matmul %20, %11, %cst_18 {dimension_numbers = #tpu.dot_dimension_numbers<[1], [0], [0], [1], [0, 0, 1, 1], [], []>} : vector<8x128xbf16>, vector<128x384xbf16>, vector<8x384xf32> -> vector<8x384xf32>
    %22 = vector.extract_strided_slice %19 {offsets = [0, 0], sizes = [8, 256], strides = [1, 1]} : vector<8x384xf32> to vector<8x256xf32>
    %23 = vector.extract_strided_slice %21 {offsets = [0, 0], sizes = [8, 256], strides = [1, 1]} : vector<8x384xf32> to vector<8x256xf32>
    %24 = arith.addf %22, %23 : vector<8x256xf32>
    %25 = arith.negf %24 : vector<8x256xf32>
    %26 = math.exp %25 : vector<8x256xf32>
    %cst_19 = arith.constant 1.000000e+00 : f32
    %27 = vector.broadcast %cst_19 : f32 to vector<8x256xf32>
    %28 = arith.addf %27, %26 : vector<8x256xf32>
    %29 = arith.divf %27, %28 : vector<8x256xf32>
    %30 = vector.extract_strided_slice %29 {offsets = [0, 0], sizes = [8, 128], strides = [1, 1]} : vector<8x256xf32> to vector<8x128xf32>
    %31 = vector.extract_strided_slice %29 {offsets = [0, 128], sizes = [8, 128], strides = [1, 1]} : vector<8x256xf32> to vector<8x128xf32>
    %32 = vector.extract_strided_slice %19 {offsets = [0, 256], sizes = [8, 128], strides = [1, 1]} : vector<8x384xf32> to vector<8x128xf32>
    %33 = vector.extract_strided_slice %21 {offsets = [0, 256], sizes = [8, 128], strides = [1, 1]} : vector<8x384xf32> to vector<8x128xf32>
    %34 = arith.addf %33, %14 : vector<8x128xf32>
    %35 = arith.mulf %30, %34 : vector<8x128xf32>
    %36 = arith.addf %32, %35 : vector<8x128xf32>
    %37 = math.tanh %36 : vector<8x128xf32>
    %38 = arith.subf %15, %37 : vector<8x128xf32>
    %39 = arith.mulf %31, %38 : vector<8x128xf32>
    %40 = arith.addf %37, %39 : vector<8x128xf32>
    %c1_i32 = arith.constant 1 : i32
    %c8_i32_20 = arith.constant 8 : i32
    %41 = arith.muli %c1_i32, %c8_i32_20 : i32
    %42 = tpu.assume_multiple %41, 8 : i32
    %43 = arith.index_cast %42 : i32 to index
    %c0_21 = arith.constant 0 : index
    %44 = vector.load %arg10[%43, %c0_21] : memref<64x384xf32, #tpu.memory_space<vmem>>, vector<8x384xf32>
    %45 = arith.truncf %40 : vector<8x128xf32> to vector<8x128xbf16>
    %cst_22 = arith.constant dense<0.000000e+00> : vector<8x384xf32>
    %46 = tpu.matmul %45, %11, %cst_22 {dimension_numbers = #tpu.dot_dimension_numbers<[1], [0], [0], [1], [0, 0, 1, 1], [], []>} : vector<8x128xbf16>, vector<128x384xbf16>, vector<8x384xf32> -> vector<8x384xf32>
    %47 = vector.extract_strided_slice %44 {offsets = [0, 0], sizes = [8, 256], strides = [1, 1]} : vector<8x384xf32> to vector<8x256xf32>
    %48 = vector.extract_strided_slice %46 {offsets = [0, 0], sizes = [8, 256], strides = [1, 1]} : vector<8x384xf32> to vector<8x256xf32>
    %49 = arith.addf %47, %48 : vector<8x256xf32>
    %50 = arith.negf %49 : vector<8x256xf32>
    %51 = math.exp %50 : vector<8x256xf32>
    %cst_23 = arith.constant 1.000000e+00 : f32
    %52 = vector.broadcast %cst_23 : f32 to vector<8x256xf32>
    %53 = arith.addf %52, %51 : vector<8x256xf32>
    %54 = arith.divf %52, %53 : vector<8x256xf32>
    %55 = vector.extract_strided_slice %54 {offsets = [0, 0], sizes = [8, 128], strides = [1, 1]} : vector<8x256xf32> to vector<8x128xf32>
    %56 = vector.extract_strided_slice %54 {offsets = [0, 128], sizes = [8, 128], strides = [1, 1]} : vector<8x256xf32> to vector<8x128xf32>
    %57 = vector.extract_strided_slice %44 {offsets = [0, 256], sizes = [8, 128], strides = [1, 1]} : vector<8x384xf32> to vector<8x128xf32>
    %58 = vector.extract_strided_slice %46 {offsets = [0, 256], sizes = [8, 128], strides = [1, 1]} : vector<8x384xf32> to vector<8x128xf32>
    %59 = arith.addf %58, %14 : vector<8x128xf32>
    %60 = arith.mulf %55, %59 : vector<8x128xf32>
    %61 = arith.addf %57, %60 : vector<8x128xf32>
    %62 = math.tanh %61 : vector<8x128xf32>
    %63 = arith.subf %40, %62 : vector<8x128xf32>
    %64 = arith.mulf %56, %63 : vector<8x128xf32>
    %65 = arith.addf %62, %64 : vector<8x128xf32>
    %c2_i32 = arith.constant 2 : i32
    %c8_i32_24 = arith.constant 8 : i32
    %66 = arith.muli %c2_i32, %c8_i32_24 : i32
    %67 = tpu.assume_multiple %66, 8 : i32
    %68 = arith.index_cast %67 : i32 to index
    %c0_25 = arith.constant 0 : index
    %69 = vector.load %arg10[%68, %c0_25] : memref<64x384xf32, #tpu.memory_space<vmem>>, vector<8x384xf32>
    %70 = arith.truncf %65 : vector<8x128xf32> to vector<8x128xbf16>
    %cst_26 = arith.constant dense<0.000000e+00> : vector<8x384xf32>
    %71 = tpu.matmul %70, %11, %cst_26 {dimension_numbers = #tpu.dot_dimension_numbers<[1], [0], [0], [1], [0, 0, 1, 1], [], []>} : vector<8x128xbf16>, vector<128x384xbf16>, vector<8x384xf32> -> vector<8x384xf32>
    %72 = vector.extract_strided_slice %69 {offsets = [0, 0], sizes = [8, 256], strides = [1, 1]} : vector<8x384xf32> to vector<8x256xf32>
    %73 = vector.extract_strided_slice %71 {offsets = [0, 0], sizes = [8, 256], strides = [1, 1]} : vector<8x384xf32> to vector<8x256xf32>
    %74 = arith.addf %72, %73 : vector<8x256xf32>
    %75 = arith.negf %74 : vector<8x256xf32>
    %76 = math.exp %75 : vector<8x256xf32>
    %cst_27 = arith.constant 1.000000e+00 : f32
    %77 = vector.broadcast %cst_27 : f32 to vector<8x256xf32>
    %78 = arith.addf %77, %76 : vector<8x256xf32>
    %79 = arith.divf %77, %78 : vector<8x256xf32>
    %80 = vector.extract_strided_slice %79 {offsets = [0, 0], sizes = [8, 128], strides = [1, 1]} : vector<8x256xf32> to vector<8x128xf32>
    %81 = vector.extract_strided_slice %79 {offsets = [0, 128], sizes = [8, 128], strides = [1, 1]} : vector<8x256xf32> to vector<8x128xf32>
    %82 = vector.extract_strided_slice %69 {offsets = [0, 256], sizes = [8, 128], strides = [1, 1]} : vector<8x384xf32> to vector<8x128xf32>
    %83 = vector.extract_strided_slice %71 {offsets = [0, 256], sizes = [8, 128], strides = [1, 1]} : vector<8x384xf32> to vector<8x128xf32>
    %84 = arith.addf %83, %14 : vector<8x128xf32>
    %85 = arith.mulf %80, %84 : vector<8x128xf32>
    %86 = arith.addf %82, %85 : vector<8x128xf32>
    %87 = math.tanh %86 : vector<8x128xf32>
    %88 = arith.subf %65, %87 : vector<8x128xf32>
    %89 = arith.mulf %81, %88 : vector<8x128xf32>
    %90 = arith.addf %87, %89 : vector<8x128xf32>
    %c3_i32 = arith.constant 3 : i32
    %c8_i32_28 = arith.constant 8 : i32
    %91 = arith.muli %c3_i32, %c8_i32_28 : i32
    %92 = tpu.assume_multiple %91, 8 : i32
    %93 = arith.index_cast %92 : i32 to index
    %c0_29 = arith.constant 0 : index
    %94 = vector.load %arg10[%93, %c0_29] : memref<64x384xf32, #tpu.memory_space<vmem>>, vector<8x384xf32>
    %95 = arith.truncf %90 : vector<8x128xf32> to vector<8x128xbf16>
    %cst_30 = arith.constant dense<0.000000e+00> : vector<8x384xf32>
    %96 = tpu.matmul %95, %11, %cst_30 {dimension_numbers = #tpu.dot_dimension_numbers<[1], [0], [0], [1], [0, 0, 1, 1], [], []>} : vector<8x128xbf16>, vector<128x384xbf16>, vector<8x384xf32> -> vector<8x384xf32>
    %97 = vector.extract_strided_slice %94 {offsets = [0, 0], sizes = [8, 256], strides = [1, 1]} : vector<8x384xf32> to vector<8x256xf32>
    %98 = vector.extract_strided_slice %96 {offsets = [0, 0], sizes = [8, 256], strides = [1, 1]} : vector<8x384xf32> to vector<8x256xf32>
    %99 = arith.addf %97, %98 : vector<8x256xf32>
    %100 = arith.negf %99 : vector<8x256xf32>
    %101 = math.exp %100 : vector<8x256xf32>
    %cst_31 = arith.constant 1.000000e+00 : f32
    %102 = vector.broadcast %cst_31 : f32 to vector<8x256xf32>
    %103 = arith.addf %102, %101 : vector<8x256xf32>
    %104 = arith.divf %102, %103 : vector<8x256xf32>
    %105 = vector.extract_strided_slice %104 {offsets = [0, 0], sizes = [8, 128], strides = [1, 1]} : vector<8x256xf32> to vector<8x128xf32>
    %106 = vector.extract_strided_slice %104 {offsets = [0, 128], sizes = [8, 128], strides = [1, 1]} : vector<8x256xf32> to vector<8x128xf32>
    %107 = vector.extract_strided_slice %94 {offsets = [0, 256], sizes = [8, 128], strides = [1, 1]} : vector<8x384xf32> to vector<8x128xf32>
    %108 = vector.extract_strided_slice %96 {offsets = [0, 256], sizes = [8, 128], strides = [1, 1]} : vector<8x384xf32> to vector<8x128xf32>
    %109 = arith.addf %108, %14 : vector<8x128xf32>
    %110 = arith.mulf %105, %109 : vector<8x128xf32>
    %111 = arith.addf %107, %110 : vector<8x128xf32>
    %112 = math.tanh %111 : vector<8x128xf32>
    %113 = arith.subf %90, %112 : vector<8x128xf32>
    %114 = arith.mulf %106, %113 : vector<8x128xf32>
    %115 = arith.addf %112, %114 : vector<8x128xf32>
    %c4_i32 = arith.constant 4 : i32
    %c8_i32_32 = arith.constant 8 : i32
    %116 = arith.muli %c4_i32, %c8_i32_32 : i32
    %117 = tpu.assume_multiple %116, 8 : i32
    %118 = arith.index_cast %117 : i32 to index
    %c0_33 = arith.constant 0 : index
    %119 = vector.load %arg10[%118, %c0_33] : memref<64x384xf32, #tpu.memory_space<vmem>>, vector<8x384xf32>
    %120 = arith.truncf %115 : vector<8x128xf32> to vector<8x128xbf16>
    %cst_34 = arith.constant dense<0.000000e+00> : vector<8x384xf32>
    %121 = tpu.matmul %120, %11, %cst_34 {dimension_numbers = #tpu.dot_dimension_numbers<[1], [0], [0], [1], [0, 0, 1, 1], [], []>} : vector<8x128xbf16>, vector<128x384xbf16>, vector<8x384xf32> -> vector<8x384xf32>
    %122 = vector.extract_strided_slice %119 {offsets = [0, 0], sizes = [8, 256], strides = [1, 1]} : vector<8x384xf32> to vector<8x256xf32>
    %123 = vector.extract_strided_slice %121 {offsets = [0, 0], sizes = [8, 256], strides = [1, 1]} : vector<8x384xf32> to vector<8x256xf32>
    %124 = arith.addf %122, %123 : vector<8x256xf32>
    %125 = arith.negf %124 : vector<8x256xf32>
    %126 = math.exp %125 : vector<8x256xf32>
    %cst_35 = arith.constant 1.000000e+00 : f32
    %127 = vector.broadcast %cst_35 : f32 to vector<8x256xf32>
    %128 = arith.addf %127, %126 : vector<8x256xf32>
    %129 = arith.divf %127, %128 : vector<8x256xf32>
    %130 = vector.extract_strided_slice %129 {offsets = [0, 0], sizes = [8, 128], strides = [1, 1]} : vector<8x256xf32> to vector<8x128xf32>
    %131 = vector.extract_strided_slice %129 {offsets = [0, 128], sizes = [8, 128], strides = [1, 1]} : vector<8x256xf32> to vector<8x128xf32>
    %132 = vector.extract_strided_slice %119 {offsets = [0, 256], sizes = [8, 128], strides = [1, 1]} : vector<8x384xf32> to vector<8x128xf32>
    %133 = vector.extract_strided_slice %121 {offsets = [0, 256], sizes = [8, 128], strides = [1, 1]} : vector<8x384xf32> to vector<8x128xf32>
    %134 = arith.addf %133, %14 : vector<8x128xf32>
    %135 = arith.mulf %130, %134 : vector<8x128xf32>
    %136 = arith.addf %132, %135 : vector<8x128xf32>
    %137 = math.tanh %136 : vector<8x128xf32>
    %138 = arith.subf %115, %137 : vector<8x128xf32>
    %139 = arith.mulf %131, %138 : vector<8x128xf32>
    %140 = arith.addf %137, %139 : vector<8x128xf32>
    %c5_i32 = arith.constant 5 : i32
    %c8_i32_36 = arith.constant 8 : i32
    %141 = arith.muli %c5_i32, %c8_i32_36 : i32
    %142 = tpu.assume_multiple %141, 8 : i32
    %143 = arith.index_cast %142 : i32 to index
    %c0_37 = arith.constant 0 : index
    %144 = vector.load %arg10[%143, %c0_37] : memref<64x384xf32, #tpu.memory_space<vmem>>, vector<8x384xf32>
    %145 = arith.truncf %140 : vector<8x128xf32> to vector<8x128xbf16>
    %cst_38 = arith.constant dense<0.000000e+00> : vector<8x384xf32>
    %146 = tpu.matmul %145, %11, %cst_38 {dimension_numbers = #tpu.dot_dimension_numbers<[1], [0], [0], [1], [0, 0, 1, 1], [], []>} : vector<8x128xbf16>, vector<128x384xbf16>, vector<8x384xf32> -> vector<8x384xf32>
    %147 = vector.extract_strided_slice %144 {offsets = [0, 0], sizes = [8, 256], strides = [1, 1]} : vector<8x384xf32> to vector<8x256xf32>
    %148 = vector.extract_strided_slice %146 {offsets = [0, 0], sizes = [8, 256], strides = [1, 1]} : vector<8x384xf32> to vector<8x256xf32>
    %149 = arith.addf %147, %148 : vector<8x256xf32>
    %150 = arith.negf %149 : vector<8x256xf32>
    %151 = math.exp %150 : vector<8x256xf32>
    %cst_39 = arith.constant 1.000000e+00 : f32
    %152 = vector.broadcast %cst_39 : f32 to vector<8x256xf32>
    %153 = arith.addf %152, %151 : vector<8x256xf32>
    %154 = arith.divf %152, %153 : vector<8x256xf32>
    %155 = vector.extract_strided_slice %154 {offsets = [0, 0], sizes = [8, 128], strides = [1, 1]} : vector<8x256xf32> to vector<8x128xf32>
    %156 = vector.extract_strided_slice %154 {offsets = [0, 128], sizes = [8, 128], strides = [1, 1]} : vector<8x256xf32> to vector<8x128xf32>
    %157 = vector.extract_strided_slice %144 {offsets = [0, 256], sizes = [8, 128], strides = [1, 1]} : vector<8x384xf32> to vector<8x128xf32>
    %158 = vector.extract_strided_slice %146 {offsets = [0, 256], sizes = [8, 128], strides = [1, 1]} : vector<8x384xf32> to vector<8x128xf32>
    %159 = arith.addf %158, %14 : vector<8x128xf32>
    %160 = arith.mulf %155, %159 : vector<8x128xf32>
    %161 = arith.addf %157, %160 : vector<8x128xf32>
    %162 = math.tanh %161 : vector<8x128xf32>
    %163 = arith.subf %140, %162 : vector<8x128xf32>
    %164 = arith.mulf %156, %163 : vector<8x128xf32>
    %165 = arith.addf %162, %164 : vector<8x128xf32>
    %c6_i32 = arith.constant 6 : i32
    %c8_i32_40 = arith.constant 8 : i32
    %166 = arith.muli %c6_i32, %c8_i32_40 : i32
    %167 = tpu.assume_multiple %166, 8 : i32
    %168 = arith.index_cast %167 : i32 to index
    %c0_41 = arith.constant 0 : index
    %169 = vector.load %arg10[%168, %c0_41] : memref<64x384xf32, #tpu.memory_space<vmem>>, vector<8x384xf32>
    %170 = arith.truncf %165 : vector<8x128xf32> to vector<8x128xbf16>
    %cst_42 = arith.constant dense<0.000000e+00> : vector<8x384xf32>
    %171 = tpu.matmul %170, %11, %cst_42 {dimension_numbers = #tpu.dot_dimension_numbers<[1], [0], [0], [1], [0, 0, 1, 1], [], []>} : vector<8x128xbf16>, vector<128x384xbf16>, vector<8x384xf32> -> vector<8x384xf32>
    %172 = vector.extract_strided_slice %169 {offsets = [0, 0], sizes = [8, 256], strides = [1, 1]} : vector<8x384xf32> to vector<8x256xf32>
    %173 = vector.extract_strided_slice %171 {offsets = [0, 0], sizes = [8, 256], strides = [1, 1]} : vector<8x384xf32> to vector<8x256xf32>
    %174 = arith.addf %172, %173 : vector<8x256xf32>
    %175 = arith.negf %174 : vector<8x256xf32>
    %176 = math.exp %175 : vector<8x256xf32>
    %cst_43 = arith.constant 1.000000e+00 : f32
    %177 = vector.broadcast %cst_43 : f32 to vector<8x256xf32>
    %178 = arith.addf %177, %176 : vector<8x256xf32>
    %179 = arith.divf %177, %178 : vector<8x256xf32>
    %180 = vector.extract_strided_slice %179 {offsets = [0, 0], sizes = [8, 128], strides = [1, 1]} : vector<8x256xf32> to vector<8x128xf32>
    %181 = vector.extract_strided_slice %179 {offsets = [0, 128], sizes = [8, 128], strides = [1, 1]} : vector<8x256xf32> to vector<8x128xf32>
    %182 = vector.extract_strided_slice %169 {offsets = [0, 256], sizes = [8, 128], strides = [1, 1]} : vector<8x384xf32> to vector<8x128xf32>
    %183 = vector.extract_strided_slice %171 {offsets = [0, 256], sizes = [8, 128], strides = [1, 1]} : vector<8x384xf32> to vector<8x128xf32>
    %184 = arith.addf %183, %14 : vector<8x128xf32>
    %185 = arith.mulf %180, %184 : vector<8x128xf32>
    %186 = arith.addf %182, %185 : vector<8x128xf32>
    %187 = math.tanh %186 : vector<8x128xf32>
    %188 = arith.subf %165, %187 : vector<8x128xf32>
    %189 = arith.mulf %181, %188 : vector<8x128xf32>
    %190 = arith.addf %187, %189 : vector<8x128xf32>
    %c7_i32 = arith.constant 7 : i32
    %c8_i32_44 = arith.constant 8 : i32
    %191 = arith.muli %c7_i32, %c8_i32_44 : i32
    %192 = tpu.assume_multiple %191, 8 : i32
    %193 = arith.index_cast %192 : i32 to index
    %c0_45 = arith.constant 0 : index
    %194 = vector.load %arg10[%193, %c0_45] : memref<64x384xf32, #tpu.memory_space<vmem>>, vector<8x384xf32>
    %195 = arith.truncf %190 : vector<8x128xf32> to vector<8x128xbf16>
    %cst_46 = arith.constant dense<0.000000e+00> : vector<8x384xf32>
    %196 = tpu.matmul %195, %11, %cst_46 {dimension_numbers = #tpu.dot_dimension_numbers<[1], [0], [0], [1], [0, 0, 1, 1], [], []>} : vector<8x128xbf16>, vector<128x384xbf16>, vector<8x384xf32> -> vector<8x384xf32>
    %197 = vector.extract_strided_slice %194 {offsets = [0, 0], sizes = [8, 256], strides = [1, 1]} : vector<8x384xf32> to vector<8x256xf32>
    %198 = vector.extract_strided_slice %196 {offsets = [0, 0], sizes = [8, 256], strides = [1, 1]} : vector<8x384xf32> to vector<8x256xf32>
    %199 = arith.addf %197, %198 : vector<8x256xf32>
    %200 = arith.negf %199 : vector<8x256xf32>
    %201 = math.exp %200 : vector<8x256xf32>
    %cst_47 = arith.constant 1.000000e+00 : f32
    %202 = vector.broadcast %cst_47 : f32 to vector<8x256xf32>
    %203 = arith.addf %202, %201 : vector<8x256xf32>
    %204 = arith.divf %202, %203 : vector<8x256xf32>
    %205 = vector.extract_strided_slice %204 {offsets = [0, 0], sizes = [8, 128], strides = [1, 1]} : vector<8x256xf32> to vector<8x128xf32>
    %206 = vector.extract_strided_slice %204 {offsets = [0, 128], sizes = [8, 128], strides = [1, 1]} : vector<8x256xf32> to vector<8x128xf32>
    %207 = vector.extract_strided_slice %194 {offsets = [0, 256], sizes = [8, 128], strides = [1, 1]} : vector<8x384xf32> to vector<8x128xf32>
    %208 = vector.extract_strided_slice %196 {offsets = [0, 256], sizes = [8, 128], strides = [1, 1]} : vector<8x384xf32> to vector<8x128xf32>
    %209 = arith.addf %208, %14 : vector<8x128xf32>
    %210 = arith.mulf %205, %209 : vector<8x128xf32>
    %211 = arith.addf %207, %210 : vector<8x128xf32>
    %212 = math.tanh %211 : vector<8x128xf32>
    %213 = arith.subf %190, %212 : vector<8x128xf32>
    %214 = arith.mulf %206, %213 : vector<8x128xf32>
    %215 = arith.addf %212, %214 : vector<8x128xf32>
    %c8_i32_48 = arith.constant 8 : i32
    %c0_49 = arith.constant 0 : index
    %c0_50 = arith.constant 0 : index
    %216 = vector.load %arg11[%c0_49, %c0_50] : memref<8x128xf32, #tpu.memory_space<vmem>>, vector<8x128xf32>
    tpu.vector_store %arg11[%c0_49, %c0_50], %215 {strides = array<i32>} : memref<8x128xf32, #tpu.memory_space<vmem>>, vector<8x128xf32>,
    %c0_i32_51 = arith.constant 0 : i32
    %217 = arith.cmpi eq, %arg1, %c0_i32_51 : i32
    %218 = arith.extui %217 : i1 to i32
    %c0_i32_52 = arith.constant 0 : i32
    %219 = arith.cmpi ne, %218, %c0_i32_52 : i32
    scf.if %219 {
      %220 = arith.truncf %215 : vector<8x128xf32> to vector<8x128xbf16>
      %c0_53 = arith.constant 0 : index
      %c0_54 = arith.constant 0 : index
      %221 = vector.load %arg7[%c0_53, %c0_54] : memref<128x128xbf16, #tpu.memory_space<vmem>>, vector<128x128xbf16>
      %cst_55 = arith.constant dense<0.000000e+00> : vector<8x128xf32>
      %222 = tpu.matmul %220, %221, %cst_55 {dimension_numbers = #tpu.dot_dimension_numbers<[1], [0], [0], [1], [0, 0, 1, 1], [], []>} : vector<8x128xbf16>, vector<128x128xbf16>, vector<8x128xf32> -> vector<8x128xf32>
      %c0_56 = arith.constant 0 : index
      %c0_57 = arith.constant 0 : index
      %223 = vector.load %arg8[%c0_56, %c0_57] : memref<1x128xf32, #tpu.memory_space<vmem>>, vector<1x128xf32>
      %224 = vector.broadcast %223 : vector<1x128xf32> to vector<8x128xf32>
      %225 = arith.addf %222, %224 : vector<8x128xf32>
      %c0_58 = arith.constant 0 : index
      %c0_59 = arith.constant 0 : index
      %226 = vector.load %arg9[%c0_58, %c0_59] : memref<8x128xf32, #tpu.memory_space<vmem>>, vector<8x128xf32>
      tpu.vector_store %arg9[%c0_58, %c0_59], %225 {strides = array<i32>} : memref<8x128xf32, #tpu.memory_space<vmem>>, vector<8x128xf32>,
    } else {
    }
    return
  }
  func.func @transform_0(%arg0: i32, %arg1: i32) -> (i32, i32, i32, i32) {
    %c0_i32 = arith.constant 0 : i32
    %c0_i32_0 = arith.constant 0 : i32
    %c0_i32_1 = arith.constant 0 : i32
    return %arg0, %arg1, %c0_i32, %c0_i32_0 : i32, i32, i32, i32
  }
  func.func @transform_1(%arg0: i32, %arg1: i32) -> (i32, i32) {
    %c0_i32 = arith.constant 0 : i32
    %c0_i32_0 = arith.constant 0 : i32
    %c0_i32_1 = arith.constant 0 : i32
    return %c0_i32, %c0_i32_0 : i32, i32
  }
  func.func @transform_2(%arg0: i32, %arg1: i32) -> (i32, i32) {
    %c0_i32 = arith.constant 0 : i32
    %c0_i32_0 = arith.constant 0 : i32
    %c0_i32_1 = arith.constant 0 : i32
    return %c0_i32, %c0_i32_0 : i32, i32
  }
  func.func @transform_3(%arg0: i32, %arg1: i32) -> (i32, i32) {
    %c0_i32 = arith.constant 0 : i32
    %c0_i32_0 = arith.constant 0 : i32
    %c0_i32_1 = arith.constant 0 : i32
    return %c0_i32, %c0_i32_0 : i32, i32
  }
  func.func @transform_4(%arg0: i32, %arg1: i32) -> (i32, i32) {
    %c0_i32 = arith.constant 0 : i32
    %c0_i32_0 = arith.constant 0 : i32
    %c0_i32_1 = arith.constant 0 : i32
    return %c0_i32, %c0_i32_0 : i32, i32
  }
  func.func @transform_5(%arg0: i32, %arg1: i32) -> (i32, i32) {
    %c0_i32 = arith.constant 0 : i32
    %c0_i32_0 = arith.constant 0 : i32
    %c0_i32_1 = arith.constant 0 : i32
    return %c0_i32, %c0_i32_0 : i32, i32
  }
  func.func @transform_6(%arg0: i32, %arg1: i32) -> (i32, i32) {
    %c0_i32 = arith.constant 0 : i32
    %c0_i32_0 = arith.constant 0 : i32
    %c0_i32_1 = arith.constant 0 : i32
    return %c0_i32, %c0_i32_0 : i32, i32
  }
  func.func @transform_7(%arg0: i32, %arg1: i32) -> (i32, i32) {
    %c0_i32 = arith.constant 0 : i32
    %c0_i32_0 = arith.constant 0 : i32
    return %arg0, %c0_i32 : i32, i32
  }
}

</mosaic_0001>

<bundles_post_ra>
// kernel: tpu_custom_call.1
= control target key start
LH: loop header
LB: loop body
LE: loop exit
PB: predicated region body
PF: predicated region fallthrough
CT: control target
= control target key end

     0   :  { %12 = vsyncpa [#allocation5], 0  ;;  %s2630_s0 = inlined_call_operand.vmem [shape: bf16[1,1,64,8], index: 0, kind: input, shape index: {}]   ;;  %s2631_s1 = inlined_call_operand.vmem [shape: bf16[8,384], index: 1, kind: input, shape index: {}]   ;;  %s2632_s2 = inlined_call_operand.hbm [shape: bf16[128,384], index: 2, kind: input, shape index: {}]   ;;  %s2633_s3 = inlined_call_operand.vmem [shape: f32[1,384], index: 3, kind: input, shape index: {}]   ;;  %s2634_s4 = inlined_call_operand.vmem [shape: f32[1,128], index: 4, kind: input, shape index: {}]   ;;  %s2635_s5 = inlined_call_operand.hbm [shape: bf16[128,128], index: 5, kind: input, shape index: {}]   ;;  %s2636_s6 = inlined_call_operand.vmem [shape: f32[1,128], index: 6, kind: input, shape index: {}]   ;;  %s2637_s7 = inlined_call_operand.hbm [shape: f32[8,128], index: 7, kind: output, shape index: {}]  }
   0x1   :  { %13 = vsyncpa [#allocation8], 0 }
   0x2   :  { %14 = vsyncpa [#allocation6], 0  ;;  %s2053_s24 = smov [#allocation4]   ;;  %s1981_s28 = scalar_lea.hbm %s2632_s2, 3072 }
   0x3   :  { %s24_s25 = sshll.u32 %s2053_s24, 4  ;;  %p1982_p0 = scmp.ne.s32.totalorder %s2632_s2, %s1981_s28  ;;  %s25_s25 = int_to_ptr.vmem [resolvable:$true] %s24_s25 }
   0x4   :  { %p1985_p1 = scmp.lt.u32.totalorder %s1981_s28, %s2632_s2 }
   0x6   :  { %p1987_p2 = pnand %p1985_p1, %p1982_p0 }
   0x8   :  { %1990 = shalt.err (!%p1987_p2)
}
   0x9   :  { %s1991_s10 = scalar_lea.vmem %s25_s25, 3072  ;;  %p1996_p4 = scmp.lt.s32.totalorder %s25_s25, %s25_s25 }
   0xa   :  { %p1992_p3 = scmp.ne.s32.totalorder %s25_s25, %s1991_s10  ;;  %p1997_p5 = scmp.lt.s32.totalorder %s1991_s10, %s1991_s10 }
   0xc   :  { %p1998_p6 = por %p1997_p5, %p1996_p4 }
   0xe   :  { %p1999_p7 = pnand %p1998_p6, %p1992_p3 }
  0x10   :  { %2002 = shalt.err (!%p1999_p7)
}
  0x11   :  { %s2054_s11 = smov 192   ;;  %s2055_s12 = smov 12  }
  0x12   :  { %30 = dma.hbm_to_vmem [thread:$0]  %s2632_s2, 3072, %s25_s25, [#allocation5], %s2054_s11, %s2054_s11, %s2055_s12  }
  0x13   :  { %s2056_s15 = smov [#allocation7]   ;;  %s2003_s19 = scalar_lea.hbm %s2635_s5, 1024 }
  0x14   :  { %s40_s16 = sshll.u32 %s2056_s15, 4  ;;  %p2004_p8 = scmp.ne.s32.totalorder %s2635_s5, %s2003_s19  ;;  %s41_s16 = int_to_ptr.vmem [resolvable:$true] %s40_s16 }
  0x15   :  { %p2007_p9 = scmp.lt.u32.totalorder %s2003_s19, %s2635_s5 }
  0x17   :  { %p2009_p10 = pnand %p2007_p9, %p2004_p8 }
  0x19   :  { %2012 = shalt.err (!%p2009_p10)
}
  0x1a   :  { %s2013_s24 = scalar_lea.vmem %s41_s16, 1024  ;;  %p2018_p12 = scmp.lt.s32.totalorder %s41_s16, %s41_s16 }
  0x1b   :  { %p2014_p11 = scmp.ne.s32.totalorder %s41_s16, %s2013_s24  ;;  %p2019_p13 = scmp.lt.s32.totalorder %s2013_s24, %s2013_s24 }
  0x1d   :  { %p2020_p0 = por %p2019_p13, %p2018_p12 }
  0x1f   :  { %p2021_p1 = pnand %p2020_p0, %p2014_p11 }
  0x21   :  { %2024 = shalt.err (!%p2021_p1)
}
  0x22   :  { %s2057_s2 = smov 64   ;;  %s2058_s25 = smov 4  }
  0x23   :  { %46 = dma.hbm_to_vmem [thread:$0]  %s2635_s5, 1024, %s41_s16, [#allocation8], %s2057_s2, %s2057_s2, %s2058_s25  }
  0x24   :  { %2047 = dma.done.wait [#allocation5], 3072  }
  0x25   :  { %2048 = vsyncadd [#allocation5], 4294964224 }
  0x26   :  { %2049 = dma.done.wait [#allocation8], 1024  }
  0x27   :  { %2050 = vsyncadd [#allocation8], 4294966272  ;;  %v2638_v0 = vmov 0   ;;  %v69_v1 = vld [vmem:[%s2631_s1] sm:$0xff]  ;;  %vm129_vm0 = vcmask 1043456   ;;  %vm116_vm1 = vcmask 64512   ;;  %v73_v37 = vlaneseq }
  0x28   :  { %171 = vmatprep.mubr.bf16.mxu0 %v2638_v0  ;;  %v1486_v2 = vcombine.high %v69_v1, %v69_v1  ;;  %v1485_v3 = vcombine.low %v69_v1, %v69_v1  ;;  %v1837_v4 = vld [vmem:[%s2630_s0] sm:$0xff]   ;;  %v2143_v8 = vld [vmem:[#allocation4 + $0x1c] ss:$12 sps:$4 sm:$0xff]   ;;  %v2165_v15 = vld [vmem:[#allocation4 + $0x4c] ss:$12 sps:$4 sm:$0xff]   ;;  %v2640_v16 = vmov 0.0  }
  0x29   :  { %v2135_v5 = vld [vmem:[#allocation4 + $0x4] ss:$12 sps:$4 sm:$0xff]   ;;  %1635 = vmatprep.mubr.msk.bf16.mxu1 %vm116_vm1, %v1837_v4  ;;  %v2140_v7 = vld [vmem:[#allocation4] ss:$12 sps:$4 sm:$0xff]   ;;  %v1855_v11 = vld [vmem:[%s2631_s1 + $0x8] ss:$0 sps:$4 sm:$0xff]  }
  0x2a   :  { %1488 = vmatprep.subr.msk.bf16.mxu0 %vm129_vm0, %v1486_v2  ;;  %v131_v6 = vsel %vm129_vm0, %v1485_v3, 0  ;;  %v2147_v9 = vld [vmem:[#allocation4 + $0x18] ss:$12 sps:$4 sm:$0xff]   ;;  %v2151_v10 = vld [vmem:[#allocation4 + $0x34] ss:$12 sps:$4 sm:$0xff]   ;;  %v1844_v12 = vld [vmem:[%s2630_s0 + $0x8] sm:$0xff]   ;;  %1823 = vmatprep.subr.msk.bf16.mxu1 %vm129_vm0, %v1855_v11 }
  0x2b   :  { %140 = vmatpush1.bf16.msra.mxu0 %v131_v6  ;;  %v2159_v13 = vld [vmem:[#allocation4 + $0x30] ss:$12 sps:$4 sm:$0xff]   ;;  %v137_v14 = vsel %vm129_vm0, %v1855_v11, 0  ;;  %v2169_v17 = vld [vmem:[#allocation4 + $0x8] ss:$12 sps:$4 sm:$0xff]   ;;  %vm2061_vm2 = vmmov 0  }
  0x2c   :  { %476 = vmatprep.subr.bf16.mxu0 %v2135_v5  ;;  %1634 = vmatpush3.bf16.msra.mxu1 %v137_v14  ;;  %v2172_v18 = vld [vmem:[#allocation4 + $0x48] ss:$12 sps:$4 sm:$0xff]   ;;  %v2179_v20 = vld [vmem:[#allocation4 + $0x64] ss:$12 sps:$4 sm:$0xff]   ;;  %v2183_v21 = vld [vmem:[#allocation4 + $0x20] ss:$12 sps:$4 sm:$0xff]  }
  0x2d   :  { %1643 = vmatprep.subr.bf16.mxu1 %v2640_v16  ;;  %v1851_v19 = vld [vmem:[%s2630_s0 + $0x10] sm:$0xff]   ;;  %v2188_v22 = vld [vmem:[#allocation4 + $0x60] ss:$12 sps:$4 sm:$0xff]   ;;  %v2191_v23 = vld [vmem:[#allocation4 + $0x7c] ss:$12 sps:$4 sm:$0xff]   ;;  %v2062_v35 = vmov 0.0|0.0  }
  0x2e   :  { %1489 = vmatmul.mubr.msk.bf16.vlgmr.msra.gmra.mrb[0].mxu0 %vm116_vm1, %v1837_v4  ;;  %v2193_v24 = vld [vmem:[#allocation4 + $0x78] ss:$12 sps:$4 sm:$0xff]   ;;  %v2202_v27 = vld [vmem:[#allocation4 + $0x94] ss:$12 sps:$4 sm:$0xff]   ;;  %v2207_v28 = vld [vmem:[#allocation4 + $0x50] ss:$12 sps:$4 sm:$0xff]  }
  0x2f   :  { %477 = vmatpush1.bf16.msra.mxu0 %v2140_v7  ;;  %181 = vmatprep.mubr.bf16.mxu0 %v2638_v0  ;;  %v2196_v25 = vld [vmem:[#allocation4 + $0x38] ss:$12 sps:$4 sm:$0xff]   ;;  %v2211_v29 = vld [vmem:[#allocation4 + $0x90] ss:$12 sps:$4 sm:$0xff]   ;;  %v2222_v31 = vld [vmem:[#allocation4 + $0x68] ss:$12 sps:$4 sm:$0xff]  }
  0x30   :  { %478 = vmatprep.subr.bf16.mxu0 %v2143_v8  ;;  %1636 = vmatmul.mubr.msk.bf16.vlgmr.msra.gmra.mrb[0].mxu1 %vm116_vm1, %v1844_v12  ;;  %v1859_v26 = vld [vmem:[%s2630_s0 + $0x18] sm:$0xff]   ;;  %v2227_v32 = vld [vmem:[#allocation4 + $0xa8] ss:$12 sps:$4 sm:$0xff]   ;;  %v2232_v33 = vld [vmem:[#allocation4 + $0x80] ss:$12 sps:$4 sm:$0xff]   ;;  %v74_v38 = vshrl.u32 %v73_v37, 7 }
  0x31   :  { %1644 = vmatpush3.bf16.msra.mxu1 %v2169_v17  ;;  %1639 = vmatprep.mubr.msk.bf16.mxu1 %vm116_vm1, %v1851_v19  ;;  %v2219_v30 = vld [vmem:[#allocation4 + $0xac] ss:$12 sps:$4 sm:$0xff]   ;;  %v2245_v36 = vld [vmem:[#allocation4 + $0xb0] ss:$12 sps:$4 sm:$0xff]   ;;  %v71_v40 = vld [vmem:[%s2633_s3] sm:$0x7] }
  0x32   :  { %1645 = vmatprep.subr.bf16.mxu1 %v2640_v16  ;;  %v2238_v34 = vld [vmem:[#allocation4 + $0x98] ss:$12 sps:$4 sm:$0xff]   ;;  %v75_v39 = vsub.s32 0, %v74_v38  ;;  %v79_v41 = vsub.s32 1, %v74_v38  ;;  %v83_v49 = vsub.s32 2, %v74_v38  ;;  %s2063_s18 = smov [#allocation9]  }
  0x33   :  { %479 = vmatpush1.bf16.msra.mxu0 %v2147_v9  ;;  %s1464_s19 = sshll.u32 %s2063_s18, 4  ;;  %s1465_s19 = int_to_ptr.vmem [resolvable:$true] %s1464_s19 }
  0x34   :  { %480 = vmatprep.subr.bf16.mxu0 %v2151_v10  ;;  %v76_v43 = vrot.slane %v71_v40, %v75_v39  ;;  %v80_v45 = vrot.slane %v71_v40, %v79_v41  ;;  %v2289_v51 = vrot.slane %v71_v40, %v83_v49  ;;  %s2025_s20 = scalar_lea.vmem %s1465_s19, 128  ;;  %p2030_p3 = scmp.lt.s32.totalorder %s1465_s19, %s1465_s19 }
  0x35   :  { %1646 = vmatpush3.bf16.msra.mxu1 %v2183_v21  ;;  %p2026_p2 = scmp.ne.s32.totalorder %s1465_s19, %s2025_s20  ;;  %p2031_p4 = scmp.lt.s32.totalorder %s2025_s20, %s2025_s20 }
  0x36   :  { %1490 = vmatmul.mubr.msk.bf16.gmra.mrb[4].mxu0 %vm116_vm1, %v1844_v12  ;;  %1647 = vmatprep.subr.bf16.mxu1 %v2640_v16 }
  0x37   :  { %481 = vmatpush1.bf16.msra.mxu0 %v2159_v13  ;;  %191 = vmatprep.mubr.bf16.mxu0 %v2638_v0  ;;  %p2032_p5 = por %p2031_p4, %p2030_p3 }
  0x38   :  { %482 = vmatprep.subr.bf16.mxu0 %v2165_v15  ;;  %1640 = vmatmul.mubr.msk.bf16.gmra.mrb[4].mxu1 %vm116_vm1, %v1859_v26 }
  0x39   :  { %1648 = vmatpush3.bf16.msra.mxu1 %v2196_v25  ;;  %1659 = vmatprep.mubr.msk.bf16.mxu1 %vm2061_vm2, %v2640_v16  ;;  %p2033_p6 = pnand %p2032_p5, %p2026_p2 }
  0x3a   :  { %1649 = vmatprep.subr.bf16.mxu1 %v2640_v16 }
  0x3b   :  { %483 = vmatpush1.bf16.msra.mxu0 %v2172_v18 }
  0x3c   :  { %484 = vmatprep.subr.bf16.mxu0 %v2179_v20 }
  0x3d   :  { %1650 = vmatpush3.bf16.msra.mxu1 %v2207_v28 }
  0x3e   :  { %1491 = vmatmul.mubr.msk.bf16.gmra.mrb[8].mxu0 %vm116_vm1, %v1851_v19  ;;  %1651 = vmatprep.subr.bf16.mxu1 %v2640_v16 }
  0x3f   :  { %485 = vmatpush1.bf16.msra.mxu0 %v2188_v22  ;;  %201 = vmatprep.mubr.bf16.mxu0 %v2638_v0 }
  0x40   :  { %486 = vmatprep.subr.bf16.mxu0 %v2191_v23 }
  0x41   :  { %1652 = vmatpush3.bf16.msra.mxu1 %v2222_v31 }
  0x42   :  { %1653 = vmatprep.subr.bf16.mxu1 %v2640_v16 }
  0x43   :  { %487 = vmatpush1.bf16.msra.mxu0 %v2193_v24 }
  0x44   :  { %488 = vmatprep.subr.bf16.mxu0 %v2202_v27 }
  0x45   :  { %1654 = vmatpush3.bf16.msra.mxu1 %v2232_v33 }
  0x46   :  { %1492 = vmatmul.mubr.msk.bf16.gmra.mrb[12].mxu0 %vm116_vm1, %v1859_v26  ;;  %1655 = vmatprep.subr.bf16.mxu1 %v2640_v16 }
  0x47   :  { %489 = vmatpush1.bf16.msra.mxu0 %v2211_v29  ;;  %508 = vmatprep.mubr.bf16.mxu0 %v2638_v0 }
  0x48   :  { %490 = vmatprep.subr.bf16.mxu0 %v2219_v30 }
  0x49   :  { %1656 = vmatpush3.bf16.msra.mxu1 %v2238_v34 }
  0x4a   :  { %1657 = vmatprep.subr.bf16.mxu1 %v2640_v16 }
  0x4b   :  { %491 = vmatpush1.bf16.msra.mxu0 %v2227_v32 }
  0x4c   :  { %585 = vmatprep.subr.bf16.mxu0 %v2135_v5 }
  0x4d   :  { %1658 = vmatpush3.bf16.msra.mxu1 %v2245_v36 }
  0x4e   :  { %509 = vmatmul.mubr.bf16.vlgmr.msra.gmra.mrb[16].mxu0 %v2062_v35  ;;  %1663 = vmatprep.subr.bf16.mxu1 %v2640_v16 }
  0x4f   :  { %586 = vmatpush1.bf16.msra.mxu0 %v2140_v7  ;;  %617 = vmatprep.mubr.bf16.mxu0 %v2638_v0 }
  0x50   :  { %587 = vmatprep.subr.bf16.mxu0 %v2143_v8  ;;  %1660 = vmatmul.mubr.bf16.vlgmr.msra.gmra.mrb[8].mxu1 %v2062_v35 }
  0x51   :  { %1664 = vmatpush3.bf16.msra.mxu1 %v2169_v17  ;;  %1679 = vmatprep.mubr.msk.bf16.mxu1 %vm2061_vm2, %v2640_v16 }
  0x52   :  { %1665 = vmatprep.subr.bf16.mxu1 %v2640_v16 }
  0x53   :  { %588 = vmatpush1.bf16.msra.mxu0 %v2147_v9 }
  0x54   :  { %589 = vmatprep.subr.bf16.mxu0 %v2151_v10 }
  0x55   :  { %1666 = vmatpush3.bf16.msra.mxu1 %v2183_v21 }
  0x56   :  { %1667 = vmatprep.subr.bf16.mxu1 %v2640_v16 }
  0x57   :  { %590 = vmatpush1.bf16.msra.mxu0 %v2159_v13 }
  0x58   :  { %591 = vmatprep.subr.bf16.mxu0 %v2165_v15 }
  0x59   :  { %1668 = vmatpush3.bf16.msra.mxu1 %v2196_v25 }
  0x5a   :  { %1669 = vmatprep.subr.bf16.mxu1 %v2640_v16 }
  0x5b   :  { %592 = vmatpush1.bf16.msra.mxu0 %v2172_v18 }
  0x5c   :  { %593 = vmatprep.subr.bf16.mxu0 %v2179_v20 }
  0x5d   :  { %1670 = vmatpush3.bf16.msra.mxu1 %v2207_v28 }
  0x5e   :  { %1671 = vmatprep.subr.bf16.mxu1 %v2640_v16 }
  0x5f   :  { %594 = vmatpush1.bf16.msra.mxu0 %v2188_v22 }
  0x60   :  { %595 = vmatprep.subr.bf16.mxu0 %v2191_v23 }
  0x61   :  { %1672 = vmatpush3.bf16.msra.mxu1 %v2222_v31 }
  0x62   :  { %1673 = vmatprep.subr.bf16.mxu1 %v2640_v16 }
  0x63   :  { %596 = vmatpush1.bf16.msra.mxu0 %v2193_v24 }
  0x64   :  { %597 = vmatprep.subr.bf16.mxu0 %v2202_v27 }
  0x65   :  { %1674 = vmatpush3.bf16.msra.mxu1 %v2232_v33 }
  0x66   :  { %1675 = vmatprep.subr.bf16.mxu1 %v2640_v16 }
  0x67   :  { %598 = vmatpush1.bf16.msra.mxu0 %v2211_v29 }
  0x68   :  { %599 = vmatprep.subr.bf16.mxu0 %v2219_v30 }
  0x69   :  { %1676 = vmatpush3.bf16.msra.mxu1 %v2238_v34 }
  0x6a   :  { %1677 = vmatprep.subr.bf16.mxu1 %v2640_v16 }
  0x6b   :  { %600 = vmatpush1.bf16.msra.mxu0 %v2227_v32 }
  0x6c   :  { %694 = vmatprep.subr.bf16.mxu0 %v2135_v5 }
  0x6d   :  { %1678 = vmatpush3.bf16.msra.mxu1 %v2245_v36 }
  0x6e   :  { %1683 = vmatprep.subr.bf16.mxu1 %v2640_v16 }
 0x101   :  { %v173_v42 = vpop.f32.mrb[0].mxu0 }
 0x102   :  { %v175_v44 = vpop.f32.mrb[1].mxu0 }
 0x103   :  { %v177_v46 = vpop.f32.mrb[2].mxu0  ;;  %v1637_v57 = vpop.f32.mrb[0].mxu1 }
 0x104   :  { %v2285_v47 = vadd.f32 %v177_v46, %v76_v43  ;;  %v179_v48 = vpop.f32.mrb[3].mxu0  ;;  %v2298_v60 = vadd.f32 %v1637_v57, %v2289_v51  ;;  %v246_v61 = vpop.f32.mrb[1].mxu1 }
 0x105   :  { %v2287_v50 = vadd.f32 %v179_v48, %v80_v45  ;;  %v1638_v63 = vpop.f32.mrb[2].mxu1 }
 0x106   :  { %v2303_v1 = vadd.f32 %v1638_v63, %v2289_v51  ;;  %v249_v2 = vpop.f32.mrb[3].mxu1 }
 0x107   :  { %v2306_v3 = vadd.f32 %v249_v2, %v2289_v51 }
 0x109   :  { %v183_v52 = vpop.f32.mrb[4].mxu0 }
 0x10a   :  { %v2291_v53 = vadd.f32 %v183_v52, %v76_v43  ;;  %v185_v54 = vpop.f32.mrb[5].mxu0 }
 0x10b   :  { %v2293_v55 = vadd.f32 %v185_v54, %v80_v45  ;;  %v187_v56 = vpop.f32.mrb[6].mxu0  ;;  %v1641_v19 = vpop.f32.mrb[4].mxu1 }
 0x10c   :  { %v2295_v58 = vadd.f32 %v187_v56, %v76_v43  ;;  %v189_v59 = vpop.f32.mrb[7].mxu0  ;;  %v2315_v37 = vadd.f32 %v1641_v19, %v2289_v51  ;;  %v262_v38 = vpop.f32.mrb[5].mxu1 }
 0x10d   :  { %v2300_v62 = vadd.f32 %v189_v59, %v80_v45  ;;  %v2320_v40 = vadd.f32 %v262_v38, %v2289_v51  ;;  %v1642_v41 = vpop.f32.mrb[6].mxu1 }
 0x10e   :  { %2642 = vst [vmem:[#allocation13_spill] sm:$0xff] %v2315_v37  ;;  %v2323_v46 = vadd.f32 %v1642_v41, %v2289_v51  ;;  %v265_v48 = vpop.f32.mrb[7].mxu1 }
 0x10f   :  { %v2326_v49 = vadd.f32 %v265_v48, %v2289_v51 }
 0x110   :  { %2643 = vst [vmem:[#allocation14_spill] sm:$0xff] %v2323_v46 }
 0x111   :  { %v193_v4 = vpop.f32.mrb[8].mxu0 }
 0x112   :  { %v2308_v6 = vadd.f32 %v193_v4, %v76_v43  ;;  %v195_v11 = vpop.f32.mrb[9].mxu0 }
 0x113   :  { %v2310_v12 = vadd.f32 %v195_v11, %v80_v45  ;;  %v197_v14 = vpop.f32.mrb[10].mxu0  ;;  %v174_v11 = vadd.f32 %v173_v42, %v76_v43  ;;  %v2339_v42 = vld [vmem:[%s2634_s4] ss:$0 sm:$0xff] }
 0x114   :  { %v2312_v26 = vadd.f32 %v197_v14, %v76_v43  ;;  %v199_v35 = vpop.f32.mrb[11].mxu0  ;;  %v176_v14 = vadd.f32 %v175_v44, %v80_v45 }
 0x115   :  { %v2317_v39 = vadd.f32 %v199_v35, %v80_v45 }
 0x119   :  { %v203_v52 = vpop.f32.mrb[12].mxu0 }
 0x11a   :  { %v2328_v54 = vadd.f32 %v203_v52, %v76_v43  ;;  %v205_v56 = vpop.f32.mrb[13].mxu0 }
 0x11b   :  { %v2330_v57 = vadd.f32 %v205_v56, %v80_v45  ;;  %v207_v59 = vpop.f32.mrb[14].mxu0 }
 0x11c   :  { %v2332_v63 = vadd.f32 %v207_v59, %v76_v43  ;;  %v209_v2 = vpop.f32.mrb[15].mxu0 }
 0x11d   :  { %2644 = vst [vmem:[#allocation15_spill] sm:$0xff] %v2330_v57  ;;  %v2334_v4 = vadd.f32 %v209_v2, %v80_v45 }
 0x11e   :  { %2645 = vst [vmem:[#allocation16_spill] sm:$0xff] %v2332_v63 }
 0x121   :  { %v510_v19 = vpop.f32.mrb[16].mxu0 }
 0x122   :  { %v557_v35 = vadd.f32 %v510_v19, %v174_v11  ;;  %v512_v38 = vpop.f32.mrb[17].mxu0 }
 0x123   :  { %v558_v41 = vadd.f32 %v512_v38, %v176_v14  ;;  %v514_v48 = vpop.f32.mrb[18].mxu0  ;;  %v551_v52 = vpop.f32.mrb[8].mxu1 }
 0x124   :  { %v1522_v0 = vmul.f32 -1.442695, %v557_v35  ;;  %v515_v16 = vpop.f32.mrb[19].mxu0  ;;  %v1661_v46 = vpop.f32.mrb[9].mxu1  ;;  %v571_v43 = vadd.f32 %v2339_v42, %v551_v52 }
 0x125   :  { %v554_v56 = vpop.f32.mrb[10].mxu1  ;;  %v1523_v37 = vmul.f32 -1.442695, %v558_v41 }
 0x126   :  { %1882 = vpow2.f32 %v1522_v0  ;;  %v1662_v57 = vpop.f32.mrb[11].mxu1  ;;  %v247_v0 = vadd.f32 %v246_v61, %v2289_v51  ;;  %v2646_v51 = vmov 0.0   ;;  %v2647_v61 = vmov 0  }
 0x127   :  { %1884 = vpow2.f32 %v1523_v37 }
 0x130   :  { %v1883_v59 = vpop.eup %1882 }
 0x131   :  { %v565_v63 = vadd.f32 1.0, %v1883_v59  ;;  %v1885_v44 = vpop.eup %1884 }
 0x132   :  { %v566_v46 = vadd.f32 1.0, %v1885_v44 }
 0x133   :  { %1886 = vrcp.f32 %v565_v63 }
 0x13d   :  { %v1887_v45 = vpop.eup %1886 }
 0x13e   :  { %v572_v16 = vmul.f32 %v1887_v45, %v571_v43 }
 0x140   :  { %v573_v2 = vadd.f32 %v572_v16, %v247_v0 }
 0x142   :  { %1888 = vtanh.f32 %v573_v2 }
 0x143   :  { %1890 = vrcp.f32 %v566_v46 }
 0x14c   :  { %v1889_v57 = vpop.eup %1888 }
 0x14d   :  { %v575_v11 = vsub.f32 0.0, %v1889_v57  ;;  %v1891_v37 = vpop.eup %1890 }
 0x14f   :  { %v576_v63 = vmul.f32 %v1891_v37, %v575_v11 }
 0x151   :  { %v2343_v14 = vadd.f32 %v1889_v57, %v576_v63 }
 0x153   :  { %v584_v19 = vpack.c.bf16 %v2343_v14, %v2343_v14 }
 0x155   :  { %618 = vmatmul.mubr.bf16.vlgmr.msra.gmra.mrb[20].mxu0 %v584_v19  ;;  %1680 = vmatmul.mubr.bf16.vlgmr.msra.gmra.mrb[12].mxu1 %v584_v19 }
 0x156   :  { %695 = vmatpush1.bf16.msra.mxu0 %v2140_v7  ;;  %1684 = vmatpush3.bf16.msra.mxu1 %v2169_v17 }
 0x157   :  { %696 = vmatprep.subr.bf16.mxu0 %v2143_v8  ;;  %1685 = vmatprep.subr.bf16.mxu1 %v2646_v51 }
 0x158   :  { %726 = vmatprep.mubr.bf16.mxu0 %v2647_v61  ;;  %1699 = vmatprep.mubr.msk.bf16.mxu1 %vm2061_vm2, %v2646_v51 }
 0x15a   :  { %697 = vmatpush1.bf16.msra.mxu0 %v2147_v9  ;;  %1686 = vmatpush3.bf16.msra.mxu1 %v2183_v21 }
 0x15b   :  { %698 = vmatprep.subr.bf16.mxu0 %v2151_v10  ;;  %1687 = vmatprep.subr.bf16.mxu1 %v2646_v51 }
 0x15e   :  { %699 = vmatpush1.bf16.msra.mxu0 %v2159_v13  ;;  %1688 = vmatpush3.bf16.msra.mxu1 %v2196_v25 }
 0x15f   :  { %700 = vmatprep.subr.bf16.mxu0 %v2165_v15  ;;  %1689 = vmatprep.subr.bf16.mxu1 %v2646_v51 }
 0x162   :  { %701 = vmatpush1.bf16.msra.mxu0 %v2172_v18  ;;  %1690 = vmatpush3.bf16.msra.mxu1 %v2207_v28 }
 0x163   :  { %702 = vmatprep.subr.bf16.mxu0 %v2179_v20  ;;  %1691 = vmatprep.subr.bf16.mxu1 %v2646_v51 }
 0x166   :  { %703 = vmatpush1.bf16.msra.mxu0 %v2188_v22  ;;  %1692 = vmatpush3.bf16.msra.mxu1 %v2222_v31 }
 0x167   :  { %704 = vmatprep.subr.bf16.mxu0 %v2191_v23  ;;  %1693 = vmatprep.subr.bf16.mxu1 %v2646_v51 }
 0x16a   :  { %705 = vmatpush1.bf16.msra.mxu0 %v2193_v24  ;;  %1694 = vmatpush3.bf16.msra.mxu1 %v2232_v33 }
 0x16b   :  { %706 = vmatprep.subr.bf16.mxu0 %v2202_v27  ;;  %1695 = vmatprep.subr.bf16.mxu1 %v2646_v51 }
 0x16e   :  { %707 = vmatpush1.bf16.msra.mxu0 %v2211_v29  ;;  %1696 = vmatpush3.bf16.msra.mxu1 %v2238_v34 }
 0x16f   :  { %708 = vmatprep.subr.bf16.mxu0 %v2219_v30  ;;  %1697 = vmatprep.subr.bf16.mxu1 %v2646_v51 }
 0x172   :  { %709 = vmatpush1.bf16.msra.mxu0 %v2227_v32  ;;  %1698 = vmatpush3.bf16.msra.mxu1 %v2245_v36 }
 0x173   :  { %803 = vmatprep.subr.bf16.mxu0 %v2135_v5  ;;  %1703 = vmatprep.subr.bf16.mxu1 %v2646_v51 }
 0x228   :  { %v619_v35 = vpop.f32.mrb[20].mxu0  ;;  %v660_v38 = vpop.f32.mrb[12].mxu1 }
 0x229   :  { %v666_v41 = vadd.f32 %v619_v35, %v2285_v47  ;;  %v621_v48 = vpop.f32.mrb[21].mxu0  ;;  %v1681_v52 = vpop.f32.mrb[13].mxu1  ;;  %v680_v11 = vadd.f32 %v2339_v42, %v660_v38 }
 0x22a   :  { %v667_v56 = vadd.f32 %v621_v48, %v2287_v50  ;;  %v623_v59 = vpop.f32.mrb[22].mxu0  ;;  %v663_v43 = vpop.f32.mrb[14].mxu1 }
 0x22b   :  { %v1524_v44 = vmul.f32 -1.442695, %v666_v41  ;;  %v624_v45 = vpop.f32.mrb[23].mxu0  ;;  %v1682_v0 = vpop.f32.mrb[15].mxu1 }
 0x22c   :  { %v1525_v16 = vmul.f32 -1.442695, %v667_v56 }
 0x22d   :  { %1892 = vpow2.f32 %v1524_v44 }
 0x22e   :  { %1894 = vpow2.f32 %v1525_v16 }
 0x237   :  { %v1893_v46 = vpop.eup %1892 }
 0x238   :  { %v674_v2 = vadd.f32 1.0, %v1893_v46  ;;  %v1895_v57 = vpop.eup %1894 }
 0x239   :  { %v675_v19 = vadd.f32 1.0, %v1895_v57 }
 0x23a   :  { %1896 = vrcp.f32 %v674_v2 }
 0x244   :  { %v1897_v37 = vpop.eup %1896 }
 0x245   :  { %v681_v47 = vmul.f32 %v1897_v37, %v680_v11 }
 0x247   :  { %v682_v63 = vadd.f32 %v681_v47, %v2306_v3 }
 0x249   :  { %1898 = vtanh.f32 %v682_v63 }
 0x24a   :  { %1900 = vrcp.f32 %v675_v19 }
 0x253   :  { %v1899_v50 = vpop.eup %1898 }
 0x254   :  { %v684_v35 = vsub.f32 %v2343_v14, %v1899_v50  ;;  %v1901_v41 = vpop.eup %1900 }
 0x256   :  { %v685_v48 = vmul.f32 %v1901_v41, %v684_v35 }
 0x258   :  { %v2387_v52 = vadd.f32 %v1899_v50, %v685_v48 }
 0x25a   :  { %v693_v56 = vpack.c.bf16 %v2387_v52, %v2387_v52 }
 0x25c   :  { %727 = vmatmul.mubr.bf16.vlgmr.msra.gmra.mrb[24].mxu0 %v693_v56  ;;  %1700 = vmatmul.mubr.bf16.vlgmr.msra.gmra.mrb[16].mxu1 %v693_v56 }
 0x25d   :  { %804 = vmatpush1.bf16.msra.mxu0 %v2140_v7  ;;  %1704 = vmatpush3.bf16.msra.mxu1 %v2169_v17 }
 0x25e   :  { %805 = vmatprep.subr.bf16.mxu0 %v2143_v8  ;;  %1705 = vmatprep.subr.bf16.mxu1 %v2646_v51 }
 0x25f   :  { %835 = vmatprep.mubr.bf16.mxu0 %v2647_v61  ;;  %1719 = vmatprep.mubr.msk.bf16.mxu1 %vm2061_vm2, %v2646_v51 }
 0x261   :  { %806 = vmatpush1.bf16.msra.mxu0 %v2147_v9  ;;  %1706 = vmatpush3.bf16.msra.mxu1 %v2183_v21 }
 0x262   :  { %807 = vmatprep.subr.bf16.mxu0 %v2151_v10  ;;  %1707 = vmatprep.subr.bf16.mxu1 %v2646_v51 }
 0x265   :  { %808 = vmatpush1.bf16.msra.mxu0 %v2159_v13  ;;  %1708 = vmatpush3.bf16.msra.mxu1 %v2196_v25 }
 0x266   :  { %809 = vmatprep.subr.bf16.mxu0 %v2165_v15  ;;  %1709 = vmatprep.subr.bf16.mxu1 %v2646_v51 }
 0x269   :  { %810 = vmatpush1.bf16.msra.mxu0 %v2172_v18  ;;  %1710 = vmatpush3.bf16.msra.mxu1 %v2207_v28 }
 0x26a   :  { %811 = vmatprep.subr.bf16.mxu0 %v2179_v20  ;;  %1711 = vmatprep.subr.bf16.mxu1 %v2646_v51 }
 0x26d   :  { %812 = vmatpush1.bf16.msra.mxu0 %v2188_v22  ;;  %1712 = vmatpush3.bf16.msra.mxu1 %v2222_v31 }
 0x26e   :  { %813 = vmatprep.subr.bf16.mxu0 %v2191_v23  ;;  %1713 = vmatprep.subr.bf16.mxu1 %v2646_v51 }
 0x271   :  { %814 = vmatpush1.bf16.msra.mxu0 %v2193_v24  ;;  %1714 = vmatpush3.bf16.msra.mxu1 %v2232_v33 }
 0x272   :  { %815 = vmatprep.subr.bf16.mxu0 %v2202_v27  ;;  %1715 = vmatprep.subr.bf16.mxu1 %v2646_v51 }
 0x275   :  { %816 = vmatpush1.bf16.msra.mxu0 %v2211_v29  ;;  %1716 = vmatpush3.bf16.msra.mxu1 %v2238_v34 }
 0x276   :  { %817 = vmatprep.subr.bf16.mxu0 %v2219_v30  ;;  %1717 = vmatprep.subr.bf16.mxu1 %v2646_v51 }
 0x279   :  { %818 = vmatpush1.bf16.msra.mxu0 %v2227_v32  ;;  %1718 = vmatpush3.bf16.msra.mxu1 %v2245_v36 }
 0x27a   :  { %912 = vmatprep.subr.bf16.mxu0 %v2135_v5  ;;  %1723 = vmatprep.subr.bf16.mxu1 %v2646_v51 }
 0x32f   :  { %v728_v3 = vpop.f32.mrb[24].mxu0  ;;  %v769_v14 = vpop.f32.mrb[16].mxu1 }
 0x330   :  { %v775_v38 = vadd.f32 %v728_v3, %v2291_v53  ;;  %v730_v59 = vpop.f32.mrb[25].mxu0  ;;  %v1701_v43 = vpop.f32.mrb[17].mxu1  ;;  %v789_v63 = vadd.f32 %v2339_v42, %v769_v14 }
 0x331   :  { %v776_v44 = vadd.f32 %v730_v59, %v2293_v55  ;;  %v732_v45 = vpop.f32.mrb[26].mxu0  ;;  %v772_v0 = vpop.f32.mrb[18].mxu1 }
 0x332   :  { %v1526_v16 = vmul.f32 -1.442695, %v775_v38  ;;  %v733_v46 = vpop.f32.mrb[27].mxu0  ;;  %v1702_v2 = vpop.f32.mrb[19].mxu1 }
 0x333   :  { %v1527_v57 = vmul.f32 -1.442695, %v776_v44 }
 0x334   :  { %1902 = vpow2.f32 %v1526_v16 }
 0x335   :  { %1904 = vpow2.f32 %v1527_v57 }
 0x33e   :  { %v1903_v11 = vpop.eup %1902 }
 0x33f   :  { %v783_v37 = vadd.f32 1.0, %v1903_v11  ;;  %v1905_v47 = vpop.eup %1904 }
 0x340   :  { %v784_v35 = vadd.f32 1.0, %v1905_v47 }
 0x341   :  { %1906 = vrcp.f32 %v783_v37 }
 0x34b   :  { %v1907_v19 = vpop.eup %1906 }
 0x34c   :  { %v790_v53 = vmul.f32 %v1907_v19, %v789_v63 }
 0x34e   :  { %v791_v50 = vadd.f32 %v790_v53, %v2298_v60 }
 0x350   :  { %1908 = vtanh.f32 %v791_v50 }
 0x351   :  { %1910 = vrcp.f32 %v784_v35 }
 0x35a   :  { %v1909_v55 = vpop.eup %1908 }
 0x35b   :  { %v793_v41 = vsub.f32 %v2387_v52, %v1909_v55  ;;  %v1911_v48 = vpop.eup %1910 }
 0x35d   :  { %v794_v56 = vmul.f32 %v1911_v48, %v793_v41 }
 0x35f   :  { %v2431_v3 = vadd.f32 %v1909_v55, %v794_v56 }
 0x361   :  { %v802_v38 = vpack.c.bf16 %v2431_v3, %v2431_v3 }
 0x363   :  { %836 = vmatmul.mubr.bf16.vlgmr.msra.gmra.mrb[28].mxu0 %v802_v38  ;;  %1720 = vmatmul.mubr.bf16.vlgmr.msra.gmra.mrb[20].mxu1 %v802_v38 }
 0x364   :  { %913 = vmatpush1.bf16.msra.mxu0 %v2140_v7  ;;  %1724 = vmatpush3.bf16.msra.mxu1 %v2169_v17 }
 0x365   :  { %914 = vmatprep.subr.bf16.mxu0 %v2143_v8  ;;  %1725 = vmatprep.subr.bf16.mxu1 %v2646_v51 }
 0x366   :  { %944 = vmatprep.mubr.bf16.mxu0 %v2647_v61  ;;  %1739 = vmatprep.mubr.msk.bf16.mxu1 %vm2061_vm2, %v2646_v51 }
 0x368   :  { %915 = vmatpush1.bf16.msra.mxu0 %v2147_v9  ;;  %1726 = vmatpush3.bf16.msra.mxu1 %v2183_v21 }
 0x369   :  { %916 = vmatprep.subr.bf16.mxu0 %v2151_v10  ;;  %1727 = vmatprep.subr.bf16.mxu1 %v2646_v51 }
 0x36c   :  { %917 = vmatpush1.bf16.msra.mxu0 %v2159_v13  ;;  %1728 = vmatpush3.bf16.msra.mxu1 %v2196_v25 }
 0x36d   :  { %918 = vmatprep.subr.bf16.mxu0 %v2165_v15  ;;  %1729 = vmatprep.subr.bf16.mxu1 %v2646_v51 }
 0x370   :  { %919 = vmatpush1.bf16.msra.mxu0 %v2172_v18  ;;  %1730 = vmatpush3.bf16.msra.mxu1 %v2207_v28 }
 0x371   :  { %920 = vmatprep.subr.bf16.mxu0 %v2179_v20  ;;  %1731 = vmatprep.subr.bf16.mxu1 %v2646_v51 }
 0x374   :  { %921 = vmatpush1.bf16.msra.mxu0 %v2188_v22  ;;  %1732 = vmatpush3.bf16.msra.mxu1 %v2222_v31 }
 0x375   :  { %922 = vmatprep.subr.bf16.mxu0 %v2191_v23  ;;  %1733 = vmatprep.subr.bf16.mxu1 %v2646_v51 }
 0x378   :  { %923 = vmatpush1.bf16.msra.mxu0 %v2193_v24  ;;  %1734 = vmatpush3.bf16.msra.mxu1 %v2232_v33 }
 0x379   :  { %924 = vmatprep.subr.bf16.mxu0 %v2202_v27  ;;  %1735 = vmatprep.subr.bf16.mxu1 %v2646_v51 }
 0x37c   :  { %925 = vmatpush1.bf16.msra.mxu0 %v2211_v29  ;;  %1736 = vmatpush3.bf16.msra.mxu1 %v2238_v34 }
 0x37d   :  { %926 = vmatprep.subr.bf16.mxu0 %v2219_v30  ;;  %1737 = vmatprep.subr.bf16.mxu1 %v2646_v51 }
 0x380   :  { %927 = vmatpush1.bf16.msra.mxu0 %v2227_v32  ;;  %1738 = vmatpush3.bf16.msra.mxu1 %v2245_v36 }
 0x381   :  { %1021 = vmatprep.subr.bf16.mxu0 %v2135_v5  ;;  %1743 = vmatprep.subr.bf16.mxu1 %v2646_v51 }
 0x436   :  { %v837_v60 = vpop.f32.mrb[28].mxu0  ;;  %v878_v52 = vpop.f32.mrb[20].mxu1 }
 0x437   :  { %v884_v14 = vadd.f32 %v837_v60, %v2295_v58  ;;  %v839_v59 = vpop.f32.mrb[29].mxu0  ;;  %v1721_v43 = vpop.f32.mrb[21].mxu1  ;;  %v898_v63 = vadd.f32 %v2339_v42, %v878_v52 }
 0x438   :  { %v885_v44 = vadd.f32 %v839_v59, %v2300_v62  ;;  %v841_v45 = vpop.f32.mrb[30].mxu0  ;;  %v881_v0 = vpop.f32.mrb[22].mxu1 }
 0x439   :  { %v1528_v16 = vmul.f32 -1.442695, %v884_v14  ;;  %v842_v46 = vpop.f32.mrb[31].mxu0  ;;  %v1722_v2 = vpop.f32.mrb[23].mxu1 }
 0x43a   :  { %v1529_v57 = vmul.f32 -1.442695, %v885_v44 }
 0x43b   :  { %1912 = vpow2.f32 %v1528_v16 }
 0x43c   :  { %1914 = vpow2.f32 %v1529_v57 }
 0x445   :  { %v1913_v11 = vpop.eup %1912 }
 0x446   :  { %v892_v37 = vadd.f32 1.0, %v1913_v11  ;;  %v1915_v47 = vpop.eup %1914 }
 0x447   :  { %v893_v50 = vadd.f32 1.0, %v1915_v47 }
 0x448   :  { %1916 = vrcp.f32 %v892_v37 }
 0x452   :  { %v1917_v19 = vpop.eup %1916 }
 0x453   :  { %v899_v58 = vmul.f32 %v1917_v19, %v898_v63  ;;  %v2523_v63 = vld [vmem:[#allocation4] ss:$12 sps:$4 sm:$0xff]   ;;  %v2534_v19 = vld [vmem:[#allocation4 + $0x18] ss:$12 sps:$4 sm:$0xff]  }
 0x455   :  { %v900_v53 = vadd.f32 %v899_v58, %v2303_v1  ;;  %v2538_v58 = vld [vmem:[#allocation4 + $0x34] ss:$12 sps:$4 sm:$0xff]  }
 0x457   :  { %1918 = vtanh.f32 %v900_v53 }
 0x458   :  { %1920 = vrcp.f32 %v893_v50 }
 0x461   :  { %v1919_v62 = vpop.eup %1918 }
 0x462   :  { %v902_v35 = vsub.f32 %v2431_v3, %v1919_v62  ;;  %v1921_v55 = vpop.eup %1920 }
 0x464   :  { %v903_v41 = vmul.f32 %v1921_v55, %v902_v35 }
 0x466   :  { %v2475_v48 = vadd.f32 %v1919_v62, %v903_v41 }
 0x468   :  { %v911_v56 = vpack.c.bf16 %v2475_v48, %v2475_v48 }
 0x46a   :  { %945 = vmatmul.mubr.bf16.vlgmr.msra.gmra.mrb[32].mxu0 %v911_v56  ;;  %1740 = vmatmul.mubr.bf16.vlgmr.msra.gmra.mrb[24].mxu1 %v911_v56 }
 0x46b   :  { %1022 = vmatpush1.bf16.msra.mxu0 %v2140_v7  ;;  %1744 = vmatpush3.bf16.msra.mxu1 %v2169_v17 }
 0x46c   :  { %1023 = vmatprep.subr.bf16.mxu0 %v2143_v8  ;;  %1745 = vmatprep.subr.bf16.mxu1 %v2646_v51 }
 0x46d   :  { %1053 = vmatprep.mubr.bf16.mxu0 %v2647_v61  ;;  %1759 = vmatprep.mubr.msk.bf16.mxu1 %vm2061_vm2, %v2646_v51 }
 0x46f   :  { %1024 = vmatpush1.bf16.msra.mxu0 %v2147_v9  ;;  %1746 = vmatpush3.bf16.msra.mxu1 %v2183_v21 }
 0x470   :  { %1025 = vmatprep.subr.bf16.mxu0 %v2151_v10  ;;  %1747 = vmatprep.subr.bf16.mxu1 %v2646_v51 }
 0x473   :  { %1026 = vmatpush1.bf16.msra.mxu0 %v2159_v13  ;;  %1748 = vmatpush3.bf16.msra.mxu1 %v2196_v25 }
 0x474   :  { %1027 = vmatprep.subr.bf16.mxu0 %v2165_v15  ;;  %1749 = vmatprep.subr.bf16.mxu1 %v2646_v51 }
 0x477   :  { %1028 = vmatpush1.bf16.msra.mxu0 %v2172_v18  ;;  %1750 = vmatpush3.bf16.msra.mxu1 %v2207_v28 }
 0x478   :  { %1029 = vmatprep.subr.bf16.mxu0 %v2179_v20  ;;  %1751 = vmatprep.subr.bf16.mxu1 %v2646_v51 }
 0x47b   :  { %1030 = vmatpush1.bf16.msra.mxu0 %v2188_v22  ;;  %1752 = vmatpush3.bf16.msra.mxu1 %v2222_v31 }
 0x47c   :  { %1031 = vmatprep.subr.bf16.mxu0 %v2191_v23  ;;  %1753 = vmatprep.subr.bf16.mxu1 %v2646_v51 }
 0x47f   :  { %1032 = vmatpush1.bf16.msra.mxu0 %v2193_v24  ;;  %1754 = vmatpush3.bf16.msra.mxu1 %v2232_v33 }
 0x480   :  { %1033 = vmatprep.subr.bf16.mxu0 %v2202_v27  ;;  %1755 = vmatprep.subr.bf16.mxu1 %v2646_v51 }
 0x483   :  { %1034 = vmatpush1.bf16.msra.mxu0 %v2211_v29  ;;  %1756 = vmatpush3.bf16.msra.mxu1 %v2238_v34 }
 0x484   :  { %1035 = vmatprep.subr.bf16.mxu0 %v2219_v30  ;;  %1757 = vmatprep.subr.bf16.mxu1 %v2646_v51 }
 0x487   :  { %1036 = vmatpush1.bf16.msra.mxu0 %v2227_v32  ;;  %1758 = vmatpush3.bf16.msra.mxu1 %v2245_v36 }
 0x488   :  { %1130 = vmatprep.subr.bf16.mxu0 %v2135_v5  ;;  %1763 = vmatprep.subr.bf16.mxu1 %v2646_v51 }
 0x53d   :  { %v946_v7 = vpop.f32.mrb[32].mxu0  ;;  %v987_v8 = vpop.f32.mrb[24].mxu1 }
 0x53e   :  { %v993_v9 = vadd.f32 %v946_v7, %v2308_v6  ;;  %v948_v10 = vpop.f32.mrb[33].mxu0  ;;  %v1741_v13 = vpop.f32.mrb[25].mxu1  ;;  %v1007_v45 = vadd.f32 %v2339_v42, %v987_v8 }
 0x53f   :  { %v994_v1 = vadd.f32 %v948_v10, %v2310_v12  ;;  %v950_v3 = vpop.f32.mrb[34].mxu0  ;;  %v990_v38 = vpop.f32.mrb[26].mxu1 }
 0x540   :  { %v1530_v60 = vmul.f32 -1.442695, %v993_v9  ;;  %v951_v52 = vpop.f32.mrb[35].mxu0  ;;  %v1742_v14 = vpop.f32.mrb[27].mxu1  ;;  %v1970_v3 = vld [vmem:[#allocation4 + $0x38] ss:$12 sps:$4 sm:$0xff]  }
 0x541   :  { %v1531_v59 = vmul.f32 -1.442695, %v994_v1  ;;  %v1968_v1 = vld [vmem:[#allocation4 + $0x8] ss:$12 sps:$4 sm:$0xff]   ;;  %v1971_v38 = vld [vmem:[#allocation4 + $0x4c] ss:$12 sps:$4 sm:$0xff]  }
 0x542   :  { %1922 = vpow2.f32 %v1530_v60  ;;  %v1973_v60 = vld [vmem:[#allocation4 + $0x50] ss:$12 sps:$4 sm:$0xff]   ;;  %v1975_v14 = vld [vmem:[#allocation4 + $0x60] ss:$12 sps:$4 sm:$0xff]  }
 0x543   :  { %1924 = vpow2.f32 %v1531_v59  ;;  %v1974_v52 = vld [vmem:[#allocation4 + $0x64] ss:$12 sps:$4 sm:$0xff]   ;;  %v1976_v59 = vld [vmem:[#allocation4 + $0x7c] ss:$12 sps:$4 sm:$0xff]  }
 0x54c   :  { %v1923_v43 = vpop.eup %1922 }
 0x54d   :  { %v1001_v44 = vadd.f32 1.0, %v1923_v43  ;;  %v1925_v5 = vpop.eup %1924  ;;  %v1977_v43 = vld [vmem:[#allocation4 + $0x78] ss:$12 sps:$4 sm:$0xff]  }
 0x54e   :  { %v1002_v46 = vadd.f32 1.0, %v1925_v5  ;;  %v1979_v5 = vld [vmem:[#allocation4 + $0x90] ss:$12 sps:$4 sm:$0xff]  }
 0x54f   :  { %1926 = vrcp.f32 %v1001_v44  ;;  %v1978_v44 = vld [vmem:[#allocation4 + $0x94] ss:$12 sps:$4 sm:$0xff]  }
 0x559   :  { %v1927_v0 = vpop.eup %1926 }
 0x55a   :  { %v1008_v6 = vmul.f32 %v1927_v0, %v1007_v45  ;;  %v1980_v45 = vld [vmem:[#allocation4 + $0xac] ss:$12 sps:$4 sm:$0xff]  }
 0x55c   :  { %v1009_v16 = vadd.f32 %v1008_v6, %v2320_v40  ;;  %v2527_v40 = vld [vmem:[#allocation4 + $0x1c] ss:$12 sps:$4 sm:$0xff]  }
 0x55e   :  { %1928 = vtanh.f32 %v1009_v16 }
 0x55f   :  { %1930 = vrcp.f32 %v1002_v46  ;;  %v2648_v46 = vld [vmem:[#allocation15_spill] sm:$0xff] }
 0x568   :  { %v1929_v12 = vpop.eup %1928 }
 0x569   :  { %v1011_v2 = vsub.f32 %v2475_v48, %v1929_v12  ;;  %v1931_v57 = vpop.eup %1930 }
 0x56b   :  { %v1012_v11 = vmul.f32 %v1931_v57, %v1011_v2 }
 0x56d   :  { %v2519_v37 = vadd.f32 %v1929_v12, %v1012_v11 }
 0x56f   :  { %v1020_v47 = vpack.c.bf16 %v2519_v37, %v2519_v37 }
 0x571   :  { %1054 = vmatmul.mubr.bf16.vlgmr.msra.gmra.mrb[36].mxu0 %v1020_v47  ;;  %1760 = vmatmul.mubr.bf16.vlgmr.msra.gmra.mrb[28].mxu1 %v1020_v47 }
 0x572   :  { %1131 = vmatpush1.bf16.msra.mxu0 %v2523_v63  ;;  %1764 = vmatpush3.bf16.msra.mxu1 %v2169_v17  ;;  %v2542_v17 = vld [vmem:[#allocation4 + $0x30] ss:$12 sps:$4 sm:$0xff]  }
 0x573   :  { %1132 = vmatprep.subr.bf16.mxu0 %v2527_v40  ;;  %1765 = vmatprep.subr.bf16.mxu1 %v2646_v51 }
 0x574   :  { %1162 = vmatprep.mubr.bf16.mxu0 %v2647_v61  ;;  %1779 = vmatprep.mubr.msk.bf16.mxu1 %vm2061_vm2, %v2646_v51 }
 0x576   :  { %1133 = vmatpush1.bf16.msra.mxu0 %v2534_v19  ;;  %1766 = vmatpush3.bf16.msra.mxu1 %v2183_v21 }
 0x577   :  { %1134 = vmatprep.subr.bf16.mxu0 %v2538_v58  ;;  %1767 = vmatprep.subr.bf16.mxu1 %v2646_v51 }
 0x57a   :  { %1135 = vmatpush1.bf16.msra.mxu0 %v2542_v17  ;;  %1768 = vmatpush3.bf16.msra.mxu1 %v2196_v25 }
 0x57b   :  { %1136 = vmatprep.subr.bf16.mxu0 %v2165_v15  ;;  %1769 = vmatprep.subr.bf16.mxu1 %v2646_v51  ;;  %v1967_v15 = vld [vmem:[#allocation4 + $0x4] ss:$12 sps:$4 sm:$0xff]  }
 0x57e   :  { %1137 = vmatpush1.bf16.msra.mxu0 %v2172_v18  ;;  %1770 = vmatpush3.bf16.msra.mxu1 %v2207_v28 }
 0x57f   :  { %1138 = vmatprep.subr.bf16.mxu0 %v2179_v20  ;;  %1771 = vmatprep.subr.bf16.mxu1 %v2646_v51 }
 0x582   :  { %1139 = vmatpush1.bf16.msra.mxu0 %v2188_v22  ;;  %1772 = vmatpush3.bf16.msra.mxu1 %v2222_v31 }
 0x583   :  { %1140 = vmatprep.subr.bf16.mxu0 %v2191_v23  ;;  %1773 = vmatprep.subr.bf16.mxu1 %v2646_v51 }
 0x586   :  { %1141 = vmatpush1.bf16.msra.mxu0 %v2193_v24  ;;  %1774 = vmatpush3.bf16.msra.mxu1 %v2232_v33 }
 0x587   :  { %1142 = vmatprep.subr.bf16.mxu0 %v2202_v27  ;;  %1775 = vmatprep.subr.bf16.mxu1 %v2646_v51 }
 0x58a   :  { %1143 = vmatpush1.bf16.msra.mxu0 %v2211_v29  ;;  %1776 = vmatpush3.bf16.msra.mxu1 %v2238_v34 }
 0x58b   :  { %1144 = vmatprep.subr.bf16.mxu0 %v2219_v30  ;;  %1777 = vmatprep.subr.bf16.mxu1 %v2646_v51 }
 0x58e   :  { %1145 = vmatpush1.bf16.msra.mxu0 %v2227_v32  ;;  %1778 = vmatpush3.bf16.msra.mxu1 %v2245_v36 }
 0x58f   :  { %1239 = vmatprep.subr.bf16.mxu0 %v1967_v15  ;;  %1783 = vmatprep.subr.bf16.mxu1 %v2646_v51 }
 0x644   :  { %v1055_v18 = vpop.f32.mrb[36].mxu0  ;;  %v1096_v20 = vpop.f32.mrb[28].mxu1 }
 0x645   :  { %v1102_v21 = vadd.f32 %v1055_v18, %v2312_v26  ;;  %v1057_v22 = vpop.f32.mrb[37].mxu0  ;;  %v1761_v23 = vpop.f32.mrb[29].mxu1  ;;  %v1116_v55 = vadd.f32 %v2339_v42, %v1096_v20 }
 0x646   :  { %v1103_v24 = vadd.f32 %v1057_v22, %v2317_v39  ;;  %v1059_v25 = vpop.f32.mrb[38].mxu0  ;;  %v1099_v27 = vpop.f32.mrb[30].mxu1 }
 0x647   :  { %v1532_v28 = vmul.f32 -1.442695, %v1102_v21  ;;  %v1060_v29 = vpop.f32.mrb[39].mxu0  ;;  %v1762_v30 = vpop.f32.mrb[31].mxu1  ;;  %v1874_v25 = vld [vmem:[#allocation7] sm:$0xff]   ;;  %v1875_v27 = vld [vmem:[#allocation7 + $0x8] sm:$0xff]  }
 0x648   :  { %v1533_v53 = vmul.f32 -1.442695, %v1103_v24  ;;  %v1877_v29 = vld [vmem:[#allocation7 + $0x18] sm:$0xff]   ;;  %v1878_v30 = vld [vmem:[#allocation7 + $0x20] sm:$0xff]  }
 0x649   :  { %1932 = vpow2.f32 %v1532_v28  ;;  %v1876_v28 = vld [vmem:[#allocation7 + $0x10] sm:$0xff]  }
 0x64a   :  { %1934 = vpow2.f32 %v1533_v53  ;;  %v1879_v53 = vld [vmem:[#allocation7 + $0x28] sm:$0xff]  }
 0x653   :  { %v1933_v50 = vpop.eup %1932 }
 0x654   :  { %v1110_v62 = vadd.f32 1.0, %v1933_v50  ;;  %v1935_v35 = vpop.eup %1934  ;;  %v1880_v50 = vld [vmem:[#allocation7 + $0x30] sm:$0xff]  }
 0x655   :  { %v1111_v56 = vadd.f32 1.0, %v1935_v35 }
 0x656   :  { %1936 = vrcp.f32 %v1110_v62  ;;  %v1881_v62 = vld [vmem:[#allocation7 + $0x38] sm:$0xff]  }
 0x660   :  { %v1937_v41 = vpop.eup %1936 }
 0x661   :  { %v1117_v26 = vmul.f32 %v1937_v41, %v1116_v55  ;;  %v2650_v41 = vld [vmem:[#allocation16_spill] sm:$0xff] }
 0x663   :  { %v1118_v48 = vadd.f32 %v1117_v26, %v2326_v49  ;;  %v1969_v49 = vld [vmem:[#allocation4 + $0x20] ss:$12 sps:$4 sm:$0xff]  }
 0x665   :  { %1938 = vtanh.f32 %v1118_v48 }
 0x666   :  { %1940 = vrcp.f32 %v1111_v56 }
 0x66f   :  { %v1939_v39 = vpop.eup %1938 }
 0x670   :  { %v1120_v7 = vsub.f32 %v2519_v37, %v1939_v39  ;;  %v1941_v8 = vpop.eup %1940 }
 0x672   :  { %v1121_v9 = vmul.f32 %v1941_v8, %v1120_v7 }
 0x674   :  { %v2572_v10 = vadd.f32 %v1939_v39, %v1121_v9 }
 0x676   :  { %v1129_v13 = vpack.c.bf16 %v2572_v10, %v2572_v10 }
 0x678   :  { %1163 = vmatmul.mubr.bf16.vlgmr.msra.gmra.mrb[40].mxu0 %v1129_v13  ;;  %1780 = vmatmul.mubr.bf16.vlgmr.msra.gmra.mrb[32].mxu1 %v1129_v13 }
 0x679   :  { %1240 = vmatpush1.bf16.msra.mxu0 %v2523_v63  ;;  %1784 = vmatpush3.bf16.msra.mxu1 %v1968_v1 }
 0x67a   :  { %1241 = vmatprep.subr.bf16.mxu0 %v2527_v40  ;;  %1785 = vmatprep.subr.bf16.mxu1 %v2646_v51 }
 0x67b   :  { %1271 = vmatprep.mubr.bf16.mxu0 %v2647_v61  ;;  %1799 = vmatprep.mubr.msk.bf16.mxu1 %vm2061_vm2, %v2646_v51  ;;  %v1972_v61 = vld [vmem:[#allocation4 + $0x48] ss:$12 sps:$4 sm:$0xff]  }
 0x67d   :  { %1242 = vmatpush1.bf16.msra.mxu0 %v2534_v19  ;;  %1786 = vmatpush3.bf16.msra.mxu1 %v1969_v49 }
 0x67e   :  { %1243 = vmatprep.subr.bf16.mxu0 %v2538_v58  ;;  %1787 = vmatprep.subr.bf16.mxu1 %v2646_v51  ;;  %v2649_v58 = vld [vmem:[#allocation13_spill] sm:$0xff] }
 0x681   :  { %1244 = vmatpush1.bf16.msra.mxu0 %v2542_v17  ;;  %1788 = vmatpush3.bf16.msra.mxu1 %v1970_v3 }
 0x682   :  { %1245 = vmatprep.subr.bf16.mxu0 %v1971_v38  ;;  %1789 = vmatprep.subr.bf16.mxu1 %v2646_v51 }
 0x685   :  { %1246 = vmatpush1.bf16.msra.mxu0 %v1972_v61  ;;  %1790 = vmatpush3.bf16.msra.mxu1 %v1973_v60 }
 0x686   :  { %1247 = vmatprep.subr.bf16.mxu0 %v1974_v52  ;;  %1791 = vmatprep.subr.bf16.mxu1 %v2646_v51  ;;  %v2651_v52 = vld [vmem:[#allocation14_spill] sm:$0xff] }
 0x689   :  { %1248 = vmatpush1.bf16.msra.mxu0 %v1975_v14  ;;  %1792 = vmatpush3.bf16.msra.mxu1 %v2222_v31 }
 0x68a   :  { %1249 = vmatprep.subr.bf16.mxu0 %v1976_v59  ;;  %1793 = vmatprep.subr.bf16.mxu1 %v2646_v51 }
 0x68d   :  { %1250 = vmatpush1.bf16.msra.mxu0 %v1977_v43  ;;  %1794 = vmatpush3.bf16.msra.mxu1 %v2232_v33 }
 0x68e   :  { %1251 = vmatprep.subr.bf16.mxu0 %v1978_v44  ;;  %1795 = vmatprep.subr.bf16.mxu1 %v2646_v51 }
 0x691   :  { %1252 = vmatpush1.bf16.msra.mxu0 %v1979_v5  ;;  %1796 = vmatpush3.bf16.msra.mxu1 %v2238_v34 }
 0x692   :  { %1253 = vmatprep.subr.bf16.mxu0 %v1980_v45  ;;  %1797 = vmatprep.subr.bf16.mxu1 %v2646_v51 }
 0x695   :  { %1254 = vmatpush1.bf16.msra.mxu0 %v2227_v32  ;;  %1798 = vmatpush3.bf16.msra.mxu1 %v2245_v36 }
 0x696   :  { %1803 = vmatprep.subr.bf16.mxu0 %v2646_v51 }
 0x74b   :  { %v1164_v31 = vpop.f32.mrb[40].mxu0  ;;  %v1205_v33 = vpop.f32.mrb[32].mxu1 }
 0x74c   :  { %v1211_v0 = vadd.f32 %v1164_v31, %v2328_v54  ;;  %v1166_v6 = vpop.f32.mrb[41].mxu0  ;;  %v1781_v16 = vpop.f32.mrb[33].mxu1  ;;  %v1225_v40 = vadd.f32 %v2339_v42, %v1205_v33  ;;  %v1538_v33 = vld [vmem:[%s2636_s6] ss:$0 sm:$0xff] }
 0x74d   :  { %v1212_v12 = vadd.f32 %v1166_v6, %v2648_v46  ;;  %v1168_v2 = vpop.f32.mrb[42].mxu0  ;;  %v1208_v34 = vpop.f32.mrb[34].mxu1 }
 0x74e   :  { %v1534_v57 = vmul.f32 -1.442695, %v1211_v0  ;;  %v1169_v11 = vpop.f32.mrb[43].mxu0  ;;  %v1782_v37 = vpop.f32.mrb[35].mxu1 }
 0x74f   :  { %v1535_v47 = vmul.f32 -1.442695, %v1212_v12 }
 0x750   :  { %1942 = vpow2.f32 %v1534_v57 }
 0x751   :  { %1944 = vpow2.f32 %v1535_v47 }
 0x75a   :  { %v1943_v32 = vpop.eup %1942 }
 0x75b   :  { %v1219_v63 = vadd.f32 1.0, %v1943_v32  ;;  %v1945_v36 = vpop.eup %1944 }
 0x75c   :  { %v1220_v15 = vadd.f32 1.0, %v1945_v36 }
 0x75d   :  { %1946 = vrcp.f32 %v1219_v63 }
 0x767   :  { %v1947_v19 = vpop.eup %1946 }
 0x768   :  { %v1226_v54 = vmul.f32 %v1947_v19, %v1225_v40 }
 0x76a   :  { %v1227_v17 = vadd.f32 %v1226_v54, %v2649_v58 }
 0x76c   :  { %1948 = vtanh.f32 %v1227_v17 }
 0x76d   :  { %1950 = vrcp.f32 %v1220_v15 }
 0x776   :  { %v1949_v18 = vpop.eup %1948 }
 0x777   :  { %v1229_v20 = vsub.f32 %v2572_v10, %v1949_v18  ;;  %v1951_v21 = vpop.eup %1950 }
 0x779   :  { %v1230_v22 = vmul.f32 %v1951_v21, %v1229_v20 }
 0x77b   :  { %v1231_v23 = vadd.f32 %v1949_v18, %v1230_v22 }
 0x77d   :  { %v1238_v24 = vpack.c.bf16 %v1231_v23, %v1231_v23 }
 0x77f   :  { %1272 = vmatmul.mubr.bf16.vlgmr.msra.gmra.mrb[44].mxu0 %v1238_v24  ;;  %1800 = vmatmul.mubr.bf16.vlgmr.msra.gmra.mrb[36].mxu1 %v1238_v24 }
 0x780   :  { %1819 = vmatprep.mubr.msk.bf16.mxu0 %vm2061_vm2, %v2646_v51  ;;  %1804 = vmatpush3.bf16.msra.mxu0 %v1874_v25 }
 0x781   :  { %1805 = vmatprep.subr.bf16.mxu0 %v2646_v51 }
 0x784   :  { %1806 = vmatpush3.bf16.msra.mxu0 %v1875_v27 }
 0x785   :  { %1807 = vmatprep.subr.bf16.mxu0 %v2646_v51 }
 0x788   :  { %1808 = vmatpush3.bf16.msra.mxu0 %v1876_v28 }
 0x789   :  { %1809 = vmatprep.subr.bf16.mxu0 %v2646_v51 }
 0x78c   :  { %1810 = vmatpush3.bf16.msra.mxu0 %v1877_v29 }
 0x78d   :  { %1811 = vmatprep.subr.bf16.mxu0 %v2646_v51 }
 0x790   :  { %1812 = vmatpush3.bf16.msra.mxu0 %v1878_v30 }
 0x791   :  { %1813 = vmatprep.subr.bf16.mxu0 %v2646_v51 }
 0x794   :  { %1814 = vmatpush3.bf16.msra.mxu0 %v1879_v53 }
 0x795   :  { %1815 = vmatprep.subr.bf16.mxu0 %v2646_v51 }
 0x798   :  { %1816 = vmatpush3.bf16.msra.mxu0 %v1880_v50 }
 0x799   :  { %1817 = vmatprep.subr.bf16.mxu0 %v2646_v51 }
 0x79c   :  { %1818 = vmatpush3.bf16.msra.mxu0 %v1881_v62 }
 0x852   :  { %v1273_v35 = vpop.f32.mrb[44].mxu0  ;;  %v1314_v55 = vpop.f32.mrb[36].mxu1 }
 0x853   :  { %v1320_v26 = vadd.f32 %v1273_v35, %v2650_v41  ;;  %v1275_v48 = vpop.f32.mrb[45].mxu0  ;;  %v1801_v56 = vpop.f32.mrb[37].mxu1  ;;  %v1334_v38 = vadd.f32 %v2339_v42, %v1314_v55 }
 0x854   :  { %v1321_v39 = vadd.f32 %v1275_v48, %v2334_v4  ;;  %v1277_v7 = vpop.f32.mrb[46].mxu0  ;;  %v1317_v8 = vpop.f32.mrb[38].mxu1 }
 0x855   :  { %v1536_v9 = vmul.f32 -1.442695, %v1320_v26  ;;  %v1278_v10 = vpop.f32.mrb[47].mxu0  ;;  %v1802_v13 = vpop.f32.mrb[39].mxu1 }
 0x856   :  { %v1537_v1 = vmul.f32 -1.442695, %v1321_v39 }
 0x857   :  { %1952 = vpow2.f32 %v1536_v9 }
 0x858   :  { %1954 = vpow2.f32 %v1537_v1 }
 0x861   :  { %v1953_v49 = vpop.eup %1952 }
 0x862   :  { %v1328_v3 = vadd.f32 1.0, %v1953_v49  ;;  %v1955_v51 = vpop.eup %1954 }
 0x863   :  { %v1329_v59 = vadd.f32 1.0, %v1955_v51 }
 0x864   :  { %1956 = vrcp.f32 %v1328_v3 }
 0x86e   :  { %v1957_v61 = vpop.eup %1956 }
 0x86f   :  { %v1335_v60 = vmul.f32 %v1957_v61, %v1334_v38 }
 0x871   :  { %v1336_v14 = vadd.f32 %v1335_v60, %v2651_v52 }
 0x873   :  { %1958 = vtanh.f32 %v1336_v14 }
 0x874   :  { %1960 = vrcp.f32 %v1329_v59 }
 0x87d   :  { %v1959_v4 = vpop.eup %1958 }
 0x87e   :  { %v1338_v43 = vsub.f32 %v1231_v23, %v1959_v4  ;;  %v1961_v44 = vpop.eup %1960 }
 0x880   :  { %v1339_v5 = vmul.f32 %v1961_v44, %v1338_v43 }
 0x882   :  { %v1340_v45 = vadd.f32 %v1959_v4, %v1339_v5 }
 0x884   :  { %v1345_v31 = vpack.c.bf16 %v1340_v45, %v1340_v45 }
 0x886   :  { %1820 = vmatmul.mubr.bf16.vlgmr.msra.gmra.mrb[48].mxu0 %v1345_v31 }
 0x959   :  { %v1451_v42 = vpop.f32.mrb[48].mxu0 }
 0x95a   :  { %v1452_v0 = vadd.f32 %v1538_v33, %v1451_v42  ;;  %v1821_v6 = vpop.f32.mrb[49].mxu0 }
 0x95b   :  { %v1454_v16 = vpop.f32.mrb[50].mxu0 }
 0x95c   :  { %1457 = vst [vmem:[#allocation9] sm:$0xff] %v1452_v0  ;;  %v1822_v46 = vpop.f32.mrb[51].mxu0 }
 0x95d   :  { %2036 = shalt.err (!%p2033_p6)
}
 0x95e   :  { %s2037_s6 = scalar_lea.hbm %s2637_s7, 128 }
 0x95f   :  { %p2038_p7 = scmp.ne.s32.totalorder %s2637_s7, %s2037_s6  ;;  %p2041_p8 = scmp.lt.u32.totalorder %s2037_s6, %s2637_s7 }
 0x961   :  { %p2043_p9 = pnand %p2041_p8, %p2038_p7 }
 0x963   :  { %2046 = shalt.err (!%p2043_p9)
}
 0x964   :  { %1467 = dma.vmem_to_hbm [thread:$0]  %s1465_s19, 128, %s2637_s7, [#allocation6]  }
 0x965   :  { %2051 = dma.done.wait [#allocation6], 128  }
 0x966   :  { %2052 = vsyncadd [#allocation6], 4294967168 }
 0x967   :  { %1471 = vsyncpa [#allocation5], 1 }
 0x968   :  { %1472 = vsyncpa [#allocation8], 1 }
 0x969   :  { %1473 = vsyncpa [#allocation6], 1 }

</bundles_post_ra>
